<compile_context>
chip_gen: v7x
topology: tpu7x:2x2x1
jax: 0.10.0
libtpu: 0.0.40
codegen_flags: <defaults>
</compile_context>

<pallas_src>
import functools

import jax
import jax.numpy as jnp
import numpy as np
from jax import lax
from jax.experimental import pallas as pl
from jax.experimental.pallas import tpu as pltpu


_PAD = 8  # guard rows on each side of the flattened h1 scratch buffer


def _bottleneck_kernel(
    x_ref,                     # (1, TH+2, W, Cin) f32   halo'd input tile
    w1_ref, s1_ref, t1_ref,    # (Cin, P) bf16, (1, P) f32, (1, P) f32
    w2_ref, s2_ref, t2_ref,    # (9P, P) bf16,  (1, P) f32, (1, P) f32
    w3_ref, s3_ref, t3_ref,    # (P, Cout) bf16, (1, Cout) f32, (1, Cout) f32
    out_ref,                   # (1, TH, W, Cout) f32
    h1_ref,                    # scratch: (2*_PAD + (TH+2)*W, P) f32
    *, TH, W,
):
    Cin = x_ref.shape[-1]
    P = w1_ref.shape[1]
    Cout = w3_ref.shape[1]
    L = (TH + 2) * W           # flattened rows of this tile incl. 1-row halos
    M = TH * W                 # flattened output rows of this tile

    r = pl.program_id(1)
    nr = pl.num_programs(1)

    x = x_ref[0]                                   # (TH+2, W, Cin) f32
    xm = x.reshape(L, Cin)

    # ---- conv1 (1x1) + folded bias/BN + ReLU; bf16 MXU, f32 accumulate ----
    h1 = jnp.dot(xm.astype(jnp.bfloat16), w1_ref[...],
                 preferred_element_type=jnp.float32)
    h1 = jnp.maximum(h1 * s1_ref[...] + t1_ref[...], 0.0)        # (L, P) f32

    # Halo rows that correspond to conv2's zero padding in H (only at the
    # image top for r == 0 and bottom for the last tile) must be exactly zero.
    row = lax.broadcasted_iota(jnp.int32, (L, 1), 0)
    keep = jnp.logical_and(
        jnp.logical_or(row >= W, r > 0),
        jnp.logical_or(row < L - W, r < nr - 1))
    h1 = jnp.where(keep, h1, 0.0)

    # ---- conv2 (3x3, stride 1, pad 1) ----
    # Flat-buffer trick: output (y, x) for tap (ky, kx) reads flat position
    # (y*W + x) + ky*W + kx - 1, so every tap is one contiguous row-slice.
    # The guard rows (_PAD-1 and _PAD+L) are only ever read at positions the
    # column masks zero out, so the scratch never needs zeroing.
    h1_ref[_PAD:_PAD + L, :] = h1

    col = lax.broadcasted_iota(jnp.int32, (M, 1), 0) % W
    not_left = col != 0          # masks kx == 0 taps (would read column -1)
    not_right = col != W - 1     # masks kx == 2 taps (would read column W)

    w2 = w2_ref[...]             # (9P, P) bf16, rows ordered (ky, kx, cin)
    acc = jnp.zeros((M, P), jnp.float32)
    for ky in range(3):
        for kx in range(3):
            start = _PAD + ky * W + kx - 1
            patch = h1_ref[start:start + M, :]                    # (M, P) f32
            if kx == 0:
                patch = jnp.where(not_left, patch, 0.0)
            elif kx == 2:
                patch = jnp.where(not_right, patch, 0.0)
            tap = (ky * 3 + kx) * P
            acc = acc + jnp.dot(patch.astype(jnp.bfloat16),
                                w2[tap:tap + P, :],
                                preferred_element_type=jnp.float32)
    h2 = jnp.maximum(acc * s2_ref[...] + t2_ref[...], 0.0)        # (M, P) f32

    # ---- conv3 (1x1) + folded bias/BN ----
    h3 = jnp.dot(h2.astype(jnp.bfloat16), w3_ref[...],
                 preferred_element_type=jnp.float32)
    h3 = h3 * s3_ref[...] + t3_ref[...]                           # (M, Cout)

    # ---- identity residual (central TH rows of the halo block) + ReLU ----
    res = xm[W:W + M, :]
    y = jnp.maximum(h3 + res, 0.0)
    out_ref[...] = y.reshape(1, TH, W, Cout).astype(out_ref.dtype)


def bottleneck_pallas(x, params, *, tile_h=8):
    """x: (N, H, W, Cin) f32 NHWC with Cin == 4 * planes. Returns same shape."""
    N, H, W, Cin = x.shape
    P = params["w1"].shape[1]
    Cout = params["w3"].shape[1]
    assert Cin == Cout, "identity residual requires inplanes == planes * 4"
    TH = min(tile_h, H)
    assert H % TH == 0, "H must be divisible by the row tile height"
    R = H // TH
    L = (TH + 2) * W

    # ---- wrapper-side folding: bias into BN shift, bf16 MXU weights ----
    bf16 = jnp.bfloat16
    w1 = params["w1"].astype(bf16)                       # (Cin, P)
    w2 = params["w2"].reshape(9 * P, P).astype(bf16)     # rows = (ky, kx, cin)
    w3 = params["w3"].astype(bf16)                       # (P, Cout)
    s1, s2, s3 = params["s1"], params["s2"], params["s3"]
    t1 = params["b1"] * s1 + params["t1"]
    t2 = params["b2"] * s2 + params["t2"]
    t3 = params["b3"] * s3 + params["t3"]

    # ---- halo'd row tiles: (N*R, TH+2, W, Cin); conv1 is recomputed on the
    # two halo rows so plain (non-overlapping) BlockSpecs suffice. ----
    xp = jnp.pad(x, ((0, 0), (1, 1), (0, 0), (0, 0)))
    x_halo = jnp.stack(
        [xp[:, r * TH:r * TH + TH + 2] for r in range(R)], axis=1)
    x_halo = x_halo.reshape(N * R, TH + 2, W, Cin)

    weight_args = [w1, s1, t1, w2, s2, t2, w3, s3, t3]

    def full_spec(a):
        nd = a.ndim
        return pl.BlockSpec(a.shape, lambda n, r, _nd=nd: (0,) * _nd)

    in_specs = [pl.BlockSpec((1, TH + 2, W, Cin),
                             lambda n, r: (n * R + r, 0, 0, 0))]
    in_specs += [full_spec(a) for a in weight_args]
    out_spec = pl.BlockSpec((1, TH, W, Cout), lambda n, r: (n, r, 0, 0))

    kernel = functools.partial(_bottleneck_kernel, TH=TH, W=W)

    return pl.pallas_call(
        kernel,
        out_shape=jax.ShapeDtypeStruct((N, H, W, Cout), jnp.float32),
        grid_spec=pltpu.PrefetchScalarGridSpec(
            num_scalar_prefetch=0,
            grid=(N, R),
            in_specs=in_specs,
            out_specs=out_spec,
            scratch_shapes=[pltpu.VMEM((2 * _PAD + L, P), jnp.float32)],
        ),
        compiler_params=pltpu.CompilerParams(
            dimension_semantics=("parallel", "parallel")),
    )(x_halo, *weight_args)


def bottleneck_reference(x, params, mxu_dtype=jnp.float32):
    """Pure-JAX NHWC reference of the eval-mode forward.

    mxu_dtype=float32  -> exact f32 semantics of the PyTorch module.
    mxu_dtype=bfloat16 -> conv operands cast to bf16 with f32 accumulation,
                          matching the kernel's bf16 MXU path.
    """
    dn = ("NHWC", "HWIO", "NHWC")

    def conv(h, w, padding):
        return lax.conv_general_dilated(
            h.astype(mxu_dtype), w.astype(mxu_dtype), (1, 1), padding,
            dimension_numbers=dn, preferred_element_type=jnp.float32)

    def bn(h, s, t):
        return h * s.reshape(1, 1, 1, -1) + t.reshape(1, 1, 1, -1)

    h = conv(x, params["w1"].reshape(1, 1, *params["w1"].shape), "VALID")
    h = h + params["b1"].reshape(1, 1, 1, -1)
    h = jax.nn.relu(bn(h, params["s1"], params["t1"]))

    h = conv(h, params["w2"], ((1, 1), (1, 1)))
    h = h + params["b2"].reshape(1, 1, 1, -1)
    h = jax.nn.relu(bn(h, params["s2"], params["t2"]))

    h = conv(h, params["w3"].reshape(1, 1, *params["w3"].shape), "VALID")
    h = h + params["b3"].reshape(1, 1, 1, -1)
    h = bn(h, params["s3"], params["t3"])
    return jax.nn.relu(h + x)


def make_params(key, inplanes, planes):
    eps = 1e-5
    cout = planes * 4
    ks = jax.random.split(key, 9)
    ki = iter(ks)

    def bn_fold(k, c):
        k1, k2, k3, k4 = jax.random.split(k, 4)
        gamma = 1.0 + 0.1 * jax.random.normal(k1, (c,), jnp.float32)
        beta = 0.1 * jax.random.normal(k2, (c,), jnp.float32)
        mean = 0.1 * jax.random.normal(k3, (c,), jnp.float32)
        var = 0.5 + jnp.abs(jax.random.normal(k4, (c,), jnp.float32))
        scale = gamma / jnp.sqrt(var + eps)
        shift = beta - mean * scale
        return scale.reshape(1, c), shift.reshape(1, c)

    w1 = 0.1 * jax.random.normal(next(ki), (inplanes, planes), jnp.float32)
    b1 = 0.05 * jax.random.normal(next(ki), (1, planes), jnp.float32)
    s1, t1 = bn_fold(next(ki), planes)

    w2 = 0.1 * jax.random.normal(next(ki), (3, 3, planes, planes), jnp.float32)
    b2 = 0.05 * jax.random.normal(next(ki), (1, planes), jnp.float32)
    s2, t2 = bn_fold(next(ki), planes)

    w3 = 0.1 * jax.random.normal(next(ki), (planes, cout), jnp.float32)
    b3 = 0.05 * jax.random.normal(next(ki), (1, cout), jnp.float32)
    s3, t3 = bn_fold(next(ki), cout)

    return dict(w1=w1, b1=b1, s1=s1, t1=t1,
                w2=w2, b2=b2, s2=s2, t2=t2,
                w3=w3, b3=b3, s3=s3, t3=t3)


if __name__ == "__main__":
    # Small but lane-friendly shapes: planes=32 -> inplanes = Cout = 128
    # (one full 128-lane width), spatial 16x16, batch 2, row tile 8.
    N, H, W = 2, 16, 16
    planes = 32
    inplanes = planes * 4   # required so the identity residual is shape-valid

    key = jax.random.PRNGKey(0)
    kx, kp = jax.random.split(key)
    x = jax.random.normal(kx, (N, H, W, inplanes), jnp.float32)   # NHWC
    params = make_params(kp, inplanes, planes)

    out = jax.block_until_ready(bottleneck_pallas(x, params))

    # Tight check vs a reference that uses the same bf16 MXU operands.
    ref_bf16 = jax.block_until_ready(
        bottleneck_reference(x, params, mxu_dtype=jnp.bfloat16))
    np.testing.assert_allclose(np.asarray(out), np.asarray(ref_bf16),
                               rtol=1e-2, atol=1e-2)

    # Looser check vs the exact f32 module semantics (tolerance sized for the
    # bf16 rounding of the matmul operands).
    ref_f32 = jax.block_until_ready(bottleneck_reference(x, params))
    np.testing.assert_allclose(np.asarray(out), np.asarray(ref_f32),
                               rtol=1e-1, atol=1e-1)
    print("KERNEL_OK")
</pallas_src>

<mosaic_0001>
module attributes {stable_mosaic.version = 11 : i64} {
  func.func @_bottleneck_kernel(%arg0: i32, %arg1: i32, %arg2: memref<1x10x16x128xf32, #tpu.memory_space<vmem>>, %arg3: memref<128x32xbf16, #tpu.memory_space<vmem>>, %arg4: memref<1x32xf32, #tpu.memory_space<vmem>>, %arg5: memref<1x32xf32, #tpu.memory_space<vmem>>, %arg6: memref<288x32xbf16, #tpu.memory_space<vmem>>, %arg7: memref<1x32xf32, #tpu.memory_space<vmem>>, %arg8: memref<1x32xf32, #tpu.memory_space<vmem>>, %arg9: memref<32x128xbf16, #tpu.memory_space<vmem>>, %arg10: memref<1x128xf32, #tpu.memory_space<vmem>>, %arg11: memref<1x128xf32, #tpu.memory_space<vmem>>, %arg12: memref<1x8x16x128xf32, #tpu.memory_space<vmem>>, %arg13: memref<176x32xf32, #tpu.memory_space<vmem>>) attributes {dimension_semantics = [#tpu.dimension_semantics<parallel>, #tpu.dimension_semantics<parallel>], iteration_bounds = array<i64: 2, 2>, scalar_prefetch = 0 : i64, scratch_operands = 1 : i64, tpu.core_type = #tpu.core_type<tc>, window_params = [{transform_indices = @transform_0, window_bounds = array<i64: 1, 10, 16, 128>}, {pipeline_mode = #tpu.pipeline_mode<synchronous>, transform_indices = @transform_1, window_bounds = array<i64: 128, 32>}, {pipeline_mode = #tpu.pipeline_mode<synchronous>, transform_indices = @transform_2, window_bounds = array<i64: 1, 32>}, {pipeline_mode = #tpu.pipeline_mode<synchronous>, transform_indices = @transform_3, window_bounds = array<i64: 1, 32>}, {pipeline_mode = #tpu.pipeline_mode<synchronous>, transform_indices = @transform_4, window_bounds = array<i64: 288, 32>}, {pipeline_mode = #tpu.pipeline_mode<synchronous>, transform_indices = @transform_5, window_bounds = array<i64: 1, 32>}, {pipeline_mode = #tpu.pipeline_mode<synchronous>, transform_indices = @transform_6, window_bounds = array<i64: 1, 32>}, {pipeline_mode = #tpu.pipeline_mode<synchronous>, transform_indices = @transform_7, window_bounds = array<i64: 32, 128>}, {pipeline_mode = #tpu.pipeline_mode<synchronous>, transform_indices = @transform_8, window_bounds = array<i64: 1, 128>}, {pipeline_mode = #tpu.pipeline_mode<synchronous>, transform_indices = @transform_9, window_bounds = array<i64: 1, 128>}, {transform_indices = @transform_10, window_bounds = array<i64: 1, 8, 16, 128>}]} {
    %c0 = arith.constant 0 : index
    %c0_0 = arith.constant 0 : index
    %c0_1 = arith.constant 0 : index
    %c0_2 = arith.constant 0 : index
    %0 = vector.load %arg2[%c0, %c0_0, %c0_1, %c0_2] : memref<1x10x16x128xf32, #tpu.memory_space<vmem>>, vector<1x10x16x128xf32>
    %1 = vector.shape_cast %0 : vector<1x10x16x128xf32> to vector<10x16x128xf32>
    %2 = vector.shape_cast %1 : vector<10x16x128xf32> to vector<160x128xf32>
    %3 = arith.truncf %2 : vector<160x128xf32> to vector<160x128xbf16>
    %c0_3 = arith.constant 0 : index
    %c0_4 = arith.constant 0 : index
    %4 = vector.load %arg3[%c0_3, %c0_4] : memref<128x32xbf16, #tpu.memory_space<vmem>>, vector<128x32xbf16>
    %cst = arith.constant dense<0.000000e+00> : vector<160x32xf32>
    %5 = tpu.matmul %3, %4, %cst {dimension_numbers = #tpu.dot_dimension_numbers<[1], [0], [0], [1], [0, 0, 1, 1], [], []>} : vector<160x128xbf16>, vector<128x32xbf16>, vector<160x32xf32> -> vector<160x32xf32>
    %c0_5 = arith.constant 0 : index
    %c0_6 = arith.constant 0 : index
    %6 = vector.load %arg4[%c0_5, %c0_6] : memref<1x32xf32, #tpu.memory_space<vmem>>, vector<1x32xf32>
    %7 = vector.broadcast %6 : vector<1x32xf32> to vector<160x32xf32>
    %8 = arith.mulf %5, %7 : vector<160x32xf32>
    %c0_7 = arith.constant 0 : index
    %c0_8 = arith.constant 0 : index
    %9 = vector.load %arg5[%c0_7, %c0_8] : memref<1x32xf32, #tpu.memory_space<vmem>>, vector<1x32xf32>
    %10 = vector.broadcast %9 : vector<1x32xf32> to vector<160x32xf32>
    %11 = arith.addf %8, %10 : vector<160x32xf32>
    %cst_9 = arith.constant 0.000000e+00 : f32
    %12 = vector.broadcast %cst_9 : f32 to vector<160x32xf32>
    %13 = arith.maximumf %11, %12 : vector<160x32xf32>
    %14 = tpu.iota {dimensions = array<i32: 0>} : vector<160x1xi32>
    %c16_i32 = arith.constant 16 : i32
    %15 = vector.broadcast %c16_i32 : i32 to vector<160x1xi32>
    %16 = arith.cmpi sge, %14, %15 : vector<160x1xi32>
    %c0_i32 = arith.constant 0 : i32
    %17 = arith.cmpi sgt, %arg1, %c0_i32 : i32
    %18 = vector.broadcast %17 : i1 to vector<160x1xi1>
    %19 = arith.ori %16, %18 : vector<160x1xi1>
    %c144_i32 = arith.constant 144 : i32
    %20 = vector.broadcast %c144_i32 : i32 to vector<160x1xi32>
    %21 = arith.cmpi slt, %14, %20 : vector<160x1xi32>
    %c1_i32 = arith.constant 1 : i32
    %22 = arith.cmpi slt, %arg1, %c1_i32 : i32
    %23 = vector.broadcast %22 : i1 to vector<160x1xi1>
    %24 = arith.ori %21, %23 : vector<160x1xi1>
    %25 = arith.andi %19, %24 : vector<160x1xi1>
    %cst_10 = arith.constant 0.000000e+00 : f32
    %26 = vector.shape_cast %25 : vector<160x1xi1> to vector<160x1xi1>
    %27 = vector.broadcast %26 : vector<160x1xi1> to vector<160x32xi1>
    %28 = vector.broadcast %cst_10 : f32 to vector<160x32xf32>
    %29 = arith.select %27, %13, %28 : vector<160x32xi1>, vector<160x32xf32>
    %c8 = arith.constant 8 : index
    %c0_11 = arith.constant 0 : index
    %30 = vector.load %arg13[%c8, %c0_11] : memref<176x32xf32, #tpu.memory_space<vmem>>, vector<160x32xf32>
    tpu.vector_store %arg13[%c8, %c0_11], %29 {strides = array<i32>} : memref<176x32xf32, #tpu.memory_space<vmem>>, vector<160x32xf32>,
    %31 = tpu.iota {dimensions = array<i32: 0>} : vector<128x1xi32>
    %c16_i32_12 = arith.constant 16 : i32
    %c0_i32_13 = arith.constant 0 : i32
    %32 = arith.cmpi eq, %c16_i32_12, %c0_i32_13 : i32
    %c1_i32_14 = arith.constant 1 : i32
    %33 = arith.select %32, %c1_i32_14, %c16_i32_12 : i32
    %34 = vector.broadcast %33 : i32 to vector<128x1xi32>
    %35 = arith.remsi %31, %34 : vector<128x1xi32>
    %c0_i32_15 = arith.constant 0 : i32
    %36 = vector.broadcast %c0_i32_15 : i32 to vector<128x1xi32>
    %37 = arith.cmpi ne, %35, %36 : vector<128x1xi32>
    %c0_i32_16 = arith.constant 0 : i32
    %38 = vector.broadcast %c0_i32_16 : i32 to vector<128x1xi32>
    %39 = arith.cmpi slt, %35, %38 : vector<128x1xi32>
    %c0_i32_17 = arith.constant 0 : i32
    %40 = arith.cmpi slt, %33, %c0_i32_17 : i32
    %41 = vector.broadcast %40 : i1 to vector<128x1xi1>
    %42 = vector.broadcast %41 : vector<128x1xi1> to vector<128x1xi1>
    %43 = arith.xori %39, %42 : vector<128x1xi1>
    %44 = arith.andi %43, %37 : vector<128x1xi1>
    %45 = vector.broadcast %33 : i32 to vector<128x1xi32>
    %46 = arith.addi %35, %45 : vector<128x1xi32>
    %47 = arith.select %44, %46, %35 : vector<128x1xi1>, vector<128x1xi32>
    %c0_i32_18 = arith.constant 0 : i32
    %48 = vector.broadcast %c0_i32_18 : i32 to vector<128x1xi32>
    %49 = arith.cmpi ne, %47, %48 : vector<128x1xi32>
    %c15_i32 = arith.constant 15 : i32
    %50 = vector.broadcast %c15_i32 : i32 to vector<128x1xi32>
    %51 = arith.cmpi ne, %47, %50 : vector<128x1xi32>
    %c0_19 = arith.constant 0 : index
    %c0_20 = arith.constant 0 : index
    %52 = vector.load %arg6[%c0_19, %c0_20] : memref<288x32xbf16, #tpu.memory_space<vmem>>, vector<288x32xbf16>
    %cst_21 = arith.constant 0.000000e+00 : f32
    %53 = vector.broadcast %cst_21 : f32 to vector<128x32xf32>
    %c7 = arith.constant 7 : index
    %c0_22 = arith.constant 0 : index
    %54 = vector.load %arg13[%c7, %c0_22] : memref<176x32xf32, #tpu.memory_space<vmem>>, vector<128x32xf32>
    %cst_23 = arith.constant 0.000000e+00 : f32
    %55 = vector.shape_cast %49 : vector<128x1xi1> to vector<128x1xi1>
    %56 = vector.broadcast %55 : vector<128x1xi1> to vector<128x32xi1>
    %57 = vector.broadcast %cst_23 : f32 to vector<128x32xf32>
    %58 = arith.select %56, %54, %57 : vector<128x32xi1>, vector<128x32xf32>
    %59 = arith.truncf %58 : vector<128x32xf32> to vector<128x32xbf16>
    %60 = vector.extract_strided_slice %52 {offsets = [0, 0], sizes = [32, 32], strides = [1, 1]} : vector<288x32xbf16> to vector<32x32xbf16>
    %cst_24 = arith.constant dense<0.000000e+00> : vector<128x32xf32>
    %61 = tpu.matmul %59, %60, %cst_24 {dimension_numbers = #tpu.dot_dimension_numbers<[1], [0], [0], [1], [0, 0, 1, 1], [], []>} : vector<128x32xbf16>, vector<32x32xbf16>, vector<128x32xf32> -> vector<128x32xf32>
    %62 = arith.addf %53, %61 : vector<128x32xf32>
    %c8_25 = arith.constant 8 : index
    %c0_26 = arith.constant 0 : index
    %63 = vector.load %arg13[%c8_25, %c0_26] : memref<176x32xf32, #tpu.memory_space<vmem>>, vector<128x32xf32>
    %64 = arith.truncf %63 : vector<128x32xf32> to vector<128x32xbf16>
    %65 = vector.extract_strided_slice %52 {offsets = [32, 0], sizes = [32, 32], strides = [1, 1]} : vector<288x32xbf16> to vector<32x32xbf16>
    %cst_27 = arith.constant dense<0.000000e+00> : vector<128x32xf32>
    %66 = tpu.matmul %64, %65, %cst_27 {dimension_numbers = #tpu.dot_dimension_numbers<[1], [0], [0], [1], [0, 0, 1, 1], [], []>} : vector<128x32xbf16>, vector<32x32xbf16>, vector<128x32xf32> -> vector<128x32xf32>
    %67 = arith.addf %62, %66 : vector<128x32xf32>
    %c9 = arith.constant 9 : index
    %c0_28 = arith.constant 0 : index
    %68 = vector.load %arg13[%c9, %c0_28] : memref<176x32xf32, #tpu.memory_space<vmem>>, vector<128x32xf32>
    %cst_29 = arith.constant 0.000000e+00 : f32
    %69 = vector.shape_cast %51 : vector<128x1xi1> to vector<128x1xi1>
    %70 = vector.broadcast %69 : vector<128x1xi1> to vector<128x32xi1>
    %71 = vector.broadcast %cst_29 : f32 to vector<128x32xf32>
    %72 = arith.select %70, %68, %71 : vector<128x32xi1>, vector<128x32xf32>
    %73 = arith.truncf %72 : vector<128x32xf32> to vector<128x32xbf16>
    %74 = vector.extract_strided_slice %52 {offsets = [64, 0], sizes = [32, 32], strides = [1, 1]} : vector<288x32xbf16> to vector<32x32xbf16>
    %cst_30 = arith.constant dense<0.000000e+00> : vector<128x32xf32>
    %75 = tpu.matmul %73, %74, %cst_30 {dimension_numbers = #tpu.dot_dimension_numbers<[1], [0], [0], [1], [0, 0, 1, 1], [], []>} : vector<128x32xbf16>, vector<32x32xbf16>, vector<128x32xf32> -> vector<128x32xf32>
    %76 = arith.addf %67, %75 : vector<128x32xf32>
    %c23 = arith.constant 23 : index
    %c0_31 = arith.constant 0 : index
    %77 = vector.load %arg13[%c23, %c0_31] : memref<176x32xf32, #tpu.memory_space<vmem>>, vector<128x32xf32>
    %cst_32 = arith.constant 0.000000e+00 : f32
    %78 = vector.shape_cast %49 : vector<128x1xi1> to vector<128x1xi1>
    %79 = vector.broadcast %78 : vector<128x1xi1> to vector<128x32xi1>
    %80 = vector.broadcast %cst_32 : f32 to vector<128x32xf32>
    %81 = arith.select %79, %77, %80 : vector<128x32xi1>, vector<128x32xf32>
    %82 = arith.truncf %81 : vector<128x32xf32> to vector<128x32xbf16>
    %83 = vector.extract_strided_slice %52 {offsets = [96, 0], sizes = [32, 32], strides = [1, 1]} : vector<288x32xbf16> to vector<32x32xbf16>
    %cst_33 = arith.constant dense<0.000000e+00> : vector<128x32xf32>
    %84 = tpu.matmul %82, %83, %cst_33 {dimension_numbers = #tpu.dot_dimension_numbers<[1], [0], [0], [1], [0, 0, 1, 1], [], []>} : vector<128x32xbf16>, vector<32x32xbf16>, vector<128x32xf32> -> vector<128x32xf32>
    %85 = arith.addf %76, %84 : vector<128x32xf32>
    %c24 = arith.constant 24 : index
    %c0_34 = arith.constant 0 : index
    %86 = vector.load %arg13[%c24, %c0_34] : memref<176x32xf32, #tpu.memory_space<vmem>>, vector<128x32xf32>
    %87 = arith.truncf %86 : vector<128x32xf32> to vector<128x32xbf16>
    %88 = vector.extract_strided_slice %52 {offsets = [128, 0], sizes = [32, 32], strides = [1, 1]} : vector<288x32xbf16> to vector<32x32xbf16>
    %cst_35 = arith.constant dense<0.000000e+00> : vector<128x32xf32>
    %89 = tpu.matmul %87, %88, %cst_35 {dimension_numbers = #tpu.dot_dimension_numbers<[1], [0], [0], [1], [0, 0, 1, 1], [], []>} : vector<128x32xbf16>, vector<32x32xbf16>, vector<128x32xf32> -> vector<128x32xf32>
    %90 = arith.addf %85, %89 : vector<128x32xf32>
    %c25 = arith.constant 25 : index
    %c0_36 = arith.constant 0 : index
    %91 = vector.load %arg13[%c25, %c0_36] : memref<176x32xf32, #tpu.memory_space<vmem>>, vector<128x32xf32>
    %cst_37 = arith.constant 0.000000e+00 : f32
    %92 = vector.shape_cast %51 : vector<128x1xi1> to vector<128x1xi1>
    %93 = vector.broadcast %92 : vector<128x1xi1> to vector<128x32xi1>
    %94 = vector.broadcast %cst_37 : f32 to vector<128x32xf32>
    %95 = arith.select %93, %91, %94 : vector<128x32xi1>, vector<128x32xf32>
    %96 = arith.truncf %95 : vector<128x32xf32> to vector<128x32xbf16>
    %97 = vector.extract_strided_slice %52 {offsets = [160, 0], sizes = [32, 32], strides = [1, 1]} : vector<288x32xbf16> to vector<32x32xbf16>
    %cst_38 = arith.constant dense<0.000000e+00> : vector<128x32xf32>
    %98 = tpu.matmul %96, %97, %cst_38 {dimension_numbers = #tpu.dot_dimension_numbers<[1], [0], [0], [1], [0, 0, 1, 1], [], []>} : vector<128x32xbf16>, vector<32x32xbf16>, vector<128x32xf32> -> vector<128x32xf32>
    %99 = arith.addf %90, %98 : vector<128x32xf32>
    %c39 = arith.constant 39 : index
    %c0_39 = arith.constant 0 : index
    %100 = vector.load %arg13[%c39, %c0_39] : memref<176x32xf32, #tpu.memory_space<vmem>>, vector<128x32xf32>
    %cst_40 = arith.constant 0.000000e+00 : f32
    %101 = vector.shape_cast %49 : vector<128x1xi1> to vector<128x1xi1>
    %102 = vector.broadcast %101 : vector<128x1xi1> to vector<128x32xi1>
    %103 = vector.broadcast %cst_40 : f32 to vector<128x32xf32>
    %104 = arith.select %102, %100, %103 : vector<128x32xi1>, vector<128x32xf32>
    %105 = arith.truncf %104 : vector<128x32xf32> to vector<128x32xbf16>
    %106 = vector.extract_strided_slice %52 {offsets = [192, 0], sizes = [32, 32], strides = [1, 1]} : vector<288x32xbf16> to vector<32x32xbf16>
    %cst_41 = arith.constant dense<0.000000e+00> : vector<128x32xf32>
    %107 = tpu.matmul %105, %106, %cst_41 {dimension_numbers = #tpu.dot_dimension_numbers<[1], [0], [0], [1], [0, 0, 1, 1], [], []>} : vector<128x32xbf16>, vector<32x32xbf16>, vector<128x32xf32> -> vector<128x32xf32>
    %108 = arith.addf %99, %107 : vector<128x32xf32>
    %c40 = arith.constant 40 : index
    %c0_42 = arith.constant 0 : index
    %109 = vector.load %arg13[%c40, %c0_42] : memref<176x32xf32, #tpu.memory_space<vmem>>, vector<128x32xf32>
    %110 = arith.truncf %109 : vector<128x32xf32> to vector<128x32xbf16>
    %111 = vector.extract_strided_slice %52 {offsets = [224, 0], sizes = [32, 32], strides = [1, 1]} : vector<288x32xbf16> to vector<32x32xbf16>
    %cst_43 = arith.constant dense<0.000000e+00> : vector<128x32xf32>
    %112 = tpu.matmul %110, %111, %cst_43 {dimension_numbers = #tpu.dot_dimension_numbers<[1], [0], [0], [1], [0, 0, 1, 1], [], []>} : vector<128x32xbf16>, vector<32x32xbf16>, vector<128x32xf32> -> vector<128x32xf32>
    %113 = arith.addf %108, %112 : vector<128x32xf32>
    %c41 = arith.constant 41 : index
    %c0_44 = arith.constant 0 : index
    %114 = vector.load %arg13[%c41, %c0_44] : memref<176x32xf32, #tpu.memory_space<vmem>>, vector<128x32xf32>
    %cst_45 = arith.constant 0.000000e+00 : f32
    %115 = vector.shape_cast %51 : vector<128x1xi1> to vector<128x1xi1>
    %116 = vector.broadcast %115 : vector<128x1xi1> to vector<128x32xi1>
    %117 = vector.broadcast %cst_45 : f32 to vector<128x32xf32>
    %118 = arith.select %116, %114, %117 : vector<128x32xi1>, vector<128x32xf32>
    %119 = arith.truncf %118 : vector<128x32xf32> to vector<128x32xbf16>
    %120 = vector.extract_strided_slice %52 {offsets = [256, 0], sizes = [32, 32], strides = [1, 1]} : vector<288x32xbf16> to vector<32x32xbf16>
    %cst_46 = arith.constant dense<0.000000e+00> : vector<128x32xf32>
    %121 = tpu.matmul %119, %120, %cst_46 {dimension_numbers = #tpu.dot_dimension_numbers<[1], [0], [0], [1], [0, 0, 1, 1], [], []>} : vector<128x32xbf16>, vector<32x32xbf16>, vector<128x32xf32> -> vector<128x32xf32>
    %122 = arith.addf %113, %121 : vector<128x32xf32>
    %c0_47 = arith.constant 0 : index
    %c0_48 = arith.constant 0 : index
    %123 = vector.load %arg7[%c0_47, %c0_48] : memref<1x32xf32, #tpu.memory_space<vmem>>, vector<1x32xf32>
    %124 = vector.broadcast %123 : vector<1x32xf32> to vector<128x32xf32>
    %125 = arith.mulf %122, %124 : vector<128x32xf32>
    %c0_49 = arith.constant 0 : index
    %c0_50 = arith.constant 0 : index
    %126 = vector.load %arg8[%c0_49, %c0_50] : memref<1x32xf32, #tpu.memory_space<vmem>>, vector<1x32xf32>
    %127 = vector.broadcast %126 : vector<1x32xf32> to vector<128x32xf32>
    %128 = arith.addf %125, %127 : vector<128x32xf32>
    %cst_51 = arith.constant 0.000000e+00 : f32
    %129 = vector.broadcast %cst_51 : f32 to vector<128x32xf32>
    %130 = arith.maximumf %128, %129 : vector<128x32xf32>
    %131 = arith.truncf %130 : vector<128x32xf32> to vector<128x32xbf16>
    %c0_52 = arith.constant 0 : index
    %c0_53 = arith.constant 0 : index
    %132 = vector.load %arg9[%c0_52, %c0_53] : memref<32x128xbf16, #tpu.memory_space<vmem>>, vector<32x128xbf16>
    %cst_54 = arith.constant dense<0.000000e+00> : vector<128x128xf32>
    %133 = tpu.matmul %131, %132, %cst_54 {dimension_numbers = #tpu.dot_dimension_numbers<[1], [0], [0], [1], [0, 0, 1, 1], [], []>} : vector<128x32xbf16>, vector<32x128xbf16>, vector<128x128xf32> -> vector<128x128xf32>
    %c0_55 = arith.constant 0 : index
    %c0_56 = arith.constant 0 : index
    %134 = vector.load %arg10[%c0_55, %c0_56] : memref<1x128xf32, #tpu.memory_space<vmem>>, vector<1x128xf32>
    %135 = vector.broadcast %134 : vector<1x128xf32> to vector<128x128xf32>
    %136 = arith.mulf %133, %135 : vector<128x128xf32>
    %c0_57 = arith.constant 0 : index
    %c0_58 = arith.constant 0 : index
    %137 = vector.load %arg11[%c0_57, %c0_58] : memref<1x128xf32, #tpu.memory_space<vmem>>, vector<1x128xf32>
    %138 = vector.broadcast %137 : vector<1x128xf32> to vector<128x128xf32>
    %139 = arith.addf %136, %138 : vector<128x128xf32>
    %140 = vector.extract_strided_slice %2 {offsets = [16, 0], sizes = [128, 128], strides = [1, 1]} : vector<160x128xf32> to vector<128x128xf32>
    %141 = arith.addf %139, %140 : vector<128x128xf32>
    %cst_59 = arith.constant 0.000000e+00 : f32
    %142 = vector.broadcast %cst_59 : f32 to vector<128x128xf32>
    %143 = arith.maximumf %141, %142 : vector<128x128xf32>
    %144 = vector.shape_cast %143 : vector<128x128xf32> to vector<1x8x16x128xf32>
    %c0_60 = arith.constant 0 : index
    %c0_61 = arith.constant 0 : index
    %c0_62 = arith.constant 0 : index
    %c0_63 = arith.constant 0 : index
    %145 = vector.load %arg12[%c0_60, %c0_61, %c0_62, %c0_63] : memref<1x8x16x128xf32, #tpu.memory_space<vmem>>, vector<1x8x16x128xf32>
    tpu.vector_store %arg12[%c0_60, %c0_61, %c0_62, %c0_63], %144 {strides = array<i32>} : memref<1x8x16x128xf32, #tpu.memory_space<vmem>>, vector<1x8x16x128xf32>,
    return
  }
  func.func @transform_0(%arg0: i32, %arg1: i32) -> (i32, i32, i32, i32) {
    %c2_i32 = arith.constant 2 : i32
    %0 = arith.muli %arg0, %c2_i32 : i32
    %1 = arith.addi %0, %arg1 : i32
    %c0_i32 = arith.constant 0 : i32
    %c0_i32_0 = arith.constant 0 : i32
    %c0_i32_1 = arith.constant 0 : i32
    %c0_i32_2 = arith.constant 0 : i32
    return %1, %c0_i32, %c0_i32_0, %c0_i32_1 : i32, i32, i32, i32
  }
  func.func @transform_1(%arg0: i32, %arg1: i32) -> (i32, i32) {
    %c0_i32 = arith.constant 0 : i32
    %c0_i32_0 = arith.constant 0 : i32
    %c0_i32_1 = arith.constant 0 : i32
    return %c0_i32, %c0_i32_0 : i32, i32
  }
  func.func @transform_2(%arg0: i32, %arg1: i32) -> (i32, i32) {
    %c0_i32 = arith.constant 0 : i32
    %c0_i32_0 = arith.constant 0 : i32
    %c0_i32_1 = arith.constant 0 : i32
    return %c0_i32, %c0_i32_0 : i32, i32
  }
  func.func @transform_3(%arg0: i32, %arg1: i32) -> (i32, i32) {
    %c0_i32 = arith.constant 0 : i32
    %c0_i32_0 = arith.constant 0 : i32
    %c0_i32_1 = arith.constant 0 : i32
    return %c0_i32, %c0_i32_0 : i32, i32
  }
  func.func @transform_4(%arg0: i32, %arg1: i32) -> (i32, i32) {
    %c0_i32 = arith.constant 0 : i32
    %c0_i32_0 = arith.constant 0 : i32
    %c0_i32_1 = arith.constant 0 : i32
    return %c0_i32, %c0_i32_0 : i32, i32
  }
  func.func @transform_5(%arg0: i32, %arg1: i32) -> (i32, i32) {
    %c0_i32 = arith.constant 0 : i32
    %c0_i32_0 = arith.constant 0 : i32
    %c0_i32_1 = arith.constant 0 : i32
    return %c0_i32, %c0_i32_0 : i32, i32
  }
  func.func @transform_6(%arg0: i32, %arg1: i32) -> (i32, i32) {
    %c0_i32 = arith.constant 0 : i32
    %c0_i32_0 = arith.constant 0 : i32
    %c0_i32_1 = arith.constant 0 : i32
    return %c0_i32, %c0_i32_0 : i32, i32
  }
  func.func @transform_7(%arg0: i32, %arg1: i32) -> (i32, i32) {
    %c0_i32 = arith.constant 0 : i32
    %c0_i32_0 = arith.constant 0 : i32
    %c0_i32_1 = arith.constant 0 : i32
    return %c0_i32, %c0_i32_0 : i32, i32
  }
  func.func @transform_8(%arg0: i32, %arg1: i32) -> (i32, i32) {
    %c0_i32 = arith.constant 0 : i32
    %c0_i32_0 = arith.constant 0 : i32
    %c0_i32_1 = arith.constant 0 : i32
    return %c0_i32, %c0_i32_0 : i32, i32
  }
  func.func @transform_9(%arg0: i32, %arg1: i32) -> (i32, i32) {
    %c0_i32 = arith.constant 0 : i32
    %c0_i32_0 = arith.constant 0 : i32
    %c0_i32_1 = arith.constant 0 : i32
    return %c0_i32, %c0_i32_0 : i32, i32
  }
  func.func @transform_10(%arg0: i32, %arg1: i32) -> (i32, i32, i32, i32) {
    %c0_i32 = arith.constant 0 : i32
    %c0_i32_0 = arith.constant 0 : i32
    %c0_i32_1 = arith.constant 0 : i32
    return %arg0, %arg1, %c0_i32, %c0_i32_0 : i32, i32, i32, i32
  }
}

</mosaic_0001>

<bundles_post_ra>
// kernel: tpu_custom_call.1
= control target key start
LH: loop header
LB: loop body
LE: loop exit
PB: predicated region body
PF: predicated region fallthrough
CT: control target
= control target key end

     0   :  { %s5307_s0 = inlined_call_operand.hbm [shape: f32[4,10,16,128], index: 0, kind: input, shape index: {}]   ;;  %s5308_s1 = inlined_call_operand.vmem [shape: bf16[128,32], index: 1, kind: input, shape index: {}]   ;;  %s5309_s2 = inlined_call_operand.vmem [shape: f32[1,32], index: 2, kind: input, shape index: {}]   ;;  %s5310_s3 = inlined_call_operand.vmem [shape: f32[1,32], index: 3, kind: input, shape index: {}]   ;;  %s5311_s4 = inlined_call_operand.vmem [shape: bf16[288,32], index: 4, kind: input, shape index: {}]   ;;  %s5312_s5 = inlined_call_operand.vmem [shape: f32[1,32], index: 5, kind: input, shape index: {}]   ;;  %s5313_s6 = inlined_call_operand.vmem [shape: f32[1,32], index: 6, kind: input, shape index: {}]   ;;  %s5314_s7 = inlined_call_operand.vmem [shape: bf16[32,128], index: 7, kind: input, shape index: {}]   ;;  %s5315_s8 = inlined_call_operand.vmem [shape: f32[1,128], index: 8, kind: input, shape index: {}]   ;;  %s5316_s9 = inlined_call_operand.vmem [shape: f32[1,128], index: 9, kind: input, shape index: {}]   ;;  %s5317_s10 = inlined_call_operand.hbm [shape: f32[2,16,16,128], index: 10, kind: output, shape index: {}]  }
   0x1   :  { %5325 = sst [smem:[#allocation16_spill]] %s5312_s5 }
   0x2   :  { %5326 = sst [smem:[#allocation17_spill]] %s5313_s6 }
   0x3   :  { %5327 = sst [smem:[#allocation18_spill]] %s5315_s8 }
   0x4   :  { %5328 = sst [smem:[#allocation19_spill]] %s5316_s9 }
   0x5   :  { %5329 = sst [smem:[#allocation20_spill]] %s5317_s10 }
   0x6   :  { %15 = vsyncpa [#allocation4], 0 }
   0x7   :  { %17 = vsyncpa [#allocation4 + $0x1], 0 }
   0x8   :  { %18 = vsyncpa [#allocation5], 0 }
   0x9   :  { %20 = vsyncpa [#allocation5 + $0x1], 0  ;;  %s4227_s13 = smov 0   ;;  %s4229_s14 = smov 0  }
   0xa   :  { %s4231_s15 = smov 0   ;;  %s4233_s16 = smov 0  }
   0xb   :  { %s4235_s17 = smov 0   ;;  %s4237_s18 = smov 0  }
   0xc   :  { %s4239_s19 = smov 0   ;;  %s4241_s20 = smov 0  }
   0xd   :  { %s4243_s21 = smov 0   ;;  %s4245_s22 = smov 0  }
   0xe   :  { %s4247_s23 = smov 0  }
   0xf LB: > { %5330 = sst [smem:[#allocation9_spill]] %s4152_s20  ;;  %s5319_s24 = sadd.s32 4294967295, %s4164_s23   ;;  %s4164_s23 = sphi %s4247_s23, %s26_s23   ;;  %s4160_s22 = sphi %s4245_s22, %s5392_s22   ;;  %s4156_s21 = sphi %s4243_s21, %s5391_s21   ;;  %s4152_s20 = sphi %s4241_s20, %s5390_s20   ;;  %s4148_s19 = sphi %s4239_s19, %s5389_s19   ;;  %s4144_s18 = sphi %s4237_s18, %s5398_s18   ;;  %s4140_s17 = sphi %s4235_s17, %s5397_s17   ;;  %s4136_s16 = sphi %s4233_s16, %s5396_s16   ;;  %s4132_s15 = sphi %s4231_s15, %s5395_s15   ;;  %s4128_s14 = sphi %s4229_s14, %s5394_s14   ;;  %s4124_s13 = sphi %s4227_s13, %s5393_s13  }
  0x10   : > { %5331 = sst [smem:[#allocation10_spill]] %s4156_s21  ;;  %s35_s26 = sadd.s32 1, %s4156_s21 }
  0x11   : > { %5332 = sst [smem:[#allocation11_spill]] %s4160_s22  ;;  %s38_s27 = sadd.s32 1, %s4160_s22 }
  0x12   : > { %p36_p0 = scmp.ge.s32.totalorder %s35_s26, 2  ;;  %s3247_s28 = sshll.u32 %s4160_s22, 1 }
  0x13   : > { %s4286_s29 = sadd.s32 %s4156_s21, %s3247_s28  ;;  %s49_s30 = sadd.s32 1, %s4144_s18 }
  0x14   : > { %s5400_s26 = smov (%p36_p0, %s35_s26), 0  ;;  %s5402_s27 = smov (!%p36_p0, %s38_s27), %s4160_s22 }
  0x15   : > { %5333 = sst [smem:[#allocation12_spill]] %s5400_s26  ;;  %p56_p1 = scmp.ne.s32.totalorder %s4144_s18, %s4140_s17 }
  0x16   : > { %p57_p2 = scmp.eq.s32.totalorder %s4164_s23, 0  ;;  %p40_p3 = scmp.ge.s32.totalorder %s5402_s27, 2 }
  0x17   : > { %p62_p4 = scmp.ne.s32.totalorder %s4140_s17, %s4136_s16  ;;  %p63_p6 = scmp.eq.s32.totalorder %s5319_s24, 0 }
  0x18   : > { %p4296_p5 = por %p57_p2, %p56_p1  ;;  %s5404_s27 = smov (%p40_p3, %s5402_s27), 0 }
  0x19   : > { %5335 = sst [smem:[#allocation13_spill]] %s5404_s27  ;;  %p4304_p7 = por %p63_p6, %p62_p4 }
  0x1a   : > { %s262_s16 = ssub.s32 %s4156_s21, %s5400_s26  ;;  %s3248_s28 = sshll.u32 %s5404_s27, 1 }
  0x1b   : > { %s261_s25 = ssub.s32 %s4160_s22, %s5404_s27  ;;  %s45_s10 = sadd.s32 %s3248_s28, %s5400_s26 }
  0x1c   : > { %s263_s20 = sor.u32 %s262_s16, %s261_s25  ;;  %s46_s24 = ssub.s32 %s4286_s29, %s45_s10 }
  0x1d   : > { %p264_p8 = scmp.eq.s32.totalorder %s263_s20, 0  ;;  %p47_p9 = scmp.eq.s32.totalorder %s46_s24, 0 }
  0x1e   : > { %s266_s9 = sadd.s32 1, %s4132_s15  ;;  %p276_p10 = scmp.ne.s32.totalorder %s4132_s15, %s4128_s14 }
  0x1f   : > { %s4317_s8 = scalar_select %p264_p8, %s4132_s15, %s266_s9  }
  0x20   : > { %s4320_s6 = scalar_select %p47_p9, %s4144_s18, %s49_s30  }
  0x21   : > { %s5337_s5 = sadd.s32 4294967295, %s4164_s23   ;;  %p282_p12 = scmp.ne.s32.totalorder %s4128_s14, %s4124_s13 }
  0x22   : > { %p277_p11 = scmp.eq.s32.totalorder %s5337_s5, 3  ;;  %s5338_s21 = sadd.s32 4294967294, %s4164_s23  }
  0x23   : > { %p283_p13 = scmp.eq.s32.totalorder %s5338_s21, 3  ;;  %p3874_p2 = scmp.lt.s32.totalorder %s4164_s23, 4 }
  0x24   : > { %p4330_p0 = por %p277_p11, %p276_p10  ;;  %s330_s20 = sand.u32 1, %s4144_s18  }
  0x25   : > { %p4334_p1 = por %p283_p13, %p282_p12  ;;  %s3860_s9 = smul.u32 2560, %s4286_s29 }
  0x26   : > { %s5339_s27 = scalar_select %p4330_p0, 1, 0 }
  0x27   : > { %s5340_s10 = scalar_select %p4334_p1, 1, 0 }
  0x28   : > { %s3859_s24 = smul.u32 160, %s330_s20  ;;  %s4344_s16 = scalar_lea.hbm %s5307_s0, %s3860_s9 }
  0x29   : > { %p4348_p3 = pnand %p3874_p2, %p4296_p5  ;;  %s4354_s29 = scalar_lea.sflag [#allocation4], %s330_s20 }
  0x2a   : > { %s334_s21 = scalar_lea.vmem [#allocation3], %s3859_s24  ;;  %s4012_s25 = scalar_lea.hbm %s4344_s16, 2560 }
  0x2b   : > { %s343_s28 = sshll.u32 %s334_s21, 4  ;;  %p4013_p4 = scmp.ne.s32.totalorder %s4344_s16, %s4012_s25  ;;  %s4352_s28 = int_to_ptr.vmem [resolvable:$true] %s343_s28 }
  0x2c   : > { %p4014_p6 = pneg %p4348_p3  ;;  %s4017_s30 = scalar_lea.hbm %s5307_s0, 10240 }
  0x2d   : > { %p4018_p5 = scmp.lt.u32.totalorder %s4344_s16, %s5307_s0  ;;  %p4019_p10 = scmp.lt.u32.totalorder %s4017_s30, %s4012_s25 }
  0x2e   : > { %p4015_p8 = pnand %p4014_p6, %p4013_p4  ;;  %p4021_p12 = scmp.lt.u32.totalorder %s4012_s25, %s4344_s16 }
  0x2f   : > { %p4020_p11 = por %p4019_p10, %p4018_p5 }
  0x30   : > { %p4016_p9 = pneg %p4015_p8 }
  0x31   : > { %p4022_p13 = por %p4021_p12, %p4020_p11 }
  0x33   : > { %p4023_p2 = pnand %p4022_p13, %p4016_p9 }
  0x35   : > { %4026 = shalt.err (!%p4023_p2)
}
  0x36   : > { %s4027_s20 = scalar_lea.vmem %s4352_s28, 2560  ;;  %s4166_s24 = smov [#allocation3]  }
  0x37   : > { %p4028_p4 = scmp.ne.s32.totalorder %s4352_s28, %s4027_s20  ;;  %s4032_s21 = sshll.u32 %s4166_s24, 4  ;;  %s4033_s21 = int_to_ptr.vmem [resolvable:$false] %s4032_s21 }
  0x38   : > { %s4034_s22 = scalar_lea.vmem %s4033_s21, 5120  ;;  %p4035_p0 = scmp.lt.s32.totalorder %s4352_s28, %s4033_s21 }
  0x39   : > { %p4030_p8 = pnand %p4028_p4, %p4014_p6  ;;  %p4036_p5 = scmp.lt.s32.totalorder %s4034_s22, %s4027_s20 }
  0x3b   : > { %p4031_p1 = pneg %p4030_p8  ;;  %p4037_p10 = por %p4036_p5, %p4035_p0 }
  0x3d   : > { %p4038_p11 = pnand %p4037_p10, %p4031_p1 }
  0x3f   : > { %4041 = shalt.err (!%p4038_p11)
}
  0x40   : > { %s4167_s26 = smov 128   ;;  %s4168_s25 = smov 8  }
  0x41   : > { %3869 = dma.hbm_to_vmem [thread:$0]  (!%p4348_p3), %s4344_s16, 2560, %s4352_s28, %s4354_s29, %s4167_s26, %s4167_s26, %s4168_s25  }
  0x42   : > { %p3253_p6 = scmp.ge.s32.totalorder %s4164_s23, 1  ;;  %p351_p9 = scmp.lt.s32.totalorder %s4164_s23, 5 }
  0x44   : > { %p352_p12 = pnand %p3253_p6, %p351_p9 }
  0x46   : > { %355 = sbr.rel (%p352_p12) target bundleno = 1003 (0x3eb), region = 60 }
  0x4d   : > { %s357_s11 = sand.u32 1, %s4140_s17  }
  0x4e   : > { %s3861_s9 = smul.u32 160, %s357_s11  ;;  %s358_s30 = scalar_lea.sflag [#allocation4], %s357_s11 }
  0x50   : > { %s4385_s20 = scalar_lea.vmem [#allocation3], %s3861_s9 }
  0x51   : > { %4115 = dma.done.wait (%p4304_p7), %s358_s30, 2560  }
  0x52   : > { %4117 = vsyncadd (%p4304_p7), %s358_s30, 4294964736  ;;  %v3968_v0 = vld [vmem:[%s5308_s1] sm:$0xff]   ;;  %v3969_v1 = vld [vmem:[%s5308_s1 + $0x8] sm:$0xff]   ;;  %p724_p7 = scmp.gt.s32.totalorder %s4148_s19, 0  ;;  %vm872_vm0 = vcmask 261120   ;;  %v683_v59 = vlaneseq  ;;  %p768_p0 = scmp.lt.s32.totalorder %s4148_s19, 1 }
  0x53   : > { %3495 = vmatprep.subr.bf16.mxu0 %v3968_v0  ;;  %v3970_v2 = vld [vmem:[%s5308_s1 + $0x10] sm:$0xff]   ;;  %v3971_v3 = vld [vmem:[%s5308_s1 + $0x18] sm:$0xff]   ;;  %v3972_v7 = vld [vmem:[%s5308_s1 + $0x20] sm:$0xff]   ;;  %s5380_s30 = sld [smem:[#allocation16_spill]]  ;;  %s5381_s16 = sld [smem:[#allocation17_spill]] }
  0x54   : > { %3496 = vmatpush3.bf16.msra.mxu0 %v3968_v0  ;;  %v402_v4 = vld [vmem:[%s4385_s20] sm:$0xff]  ;;  %v403_v5 = vld [vmem:[%s4385_s20 + $0x8] sm:$0xff]  ;;  %v3973_v8 = vld [vmem:[%s5308_s1 + $0x28] sm:$0xff]   ;;  %s725_s28 = scalar_select %p724_p7, 1, 0 }
  0x55   : > { %3497 = vmatprep.subr.bf16.mxu0 %v3969_v1  ;;  %v422_v6 = vpack.c.bf16 %v403_v5, %v402_v4  ;;  %v3974_v9 = vld [vmem:[%s5308_s1 + $0x30] sm:$0xff]   ;;  %v3975_v10 = vld [vmem:[%s5308_s1 + $0x38] sm:$0xff]   ;;  %v404_v11 = vld [vmem:[%s4385_s20 + $0x10] sm:$0xff]  ;;  %v4482_v4 = vshrl.u32 %v683_v59, 7  ;;  %s4603_s24 = scalar_select %p768_p0, 1, 0 }
  0x56   : > { %v405_v12 = vld [vmem:[%s4385_s20 + $0x18] sm:$0xff]  ;;  %v406_v13 = vld [vmem:[%s4385_s20 + $0x20] sm:$0xff]  ;;  %v407_v14 = vld [vmem:[%s4385_s20 + $0x28] sm:$0xff]  ;;  %v726_v50 = vstv %s725_s28  ;;  %s5382_s29 = sld [smem:[#allocation18_spill]]  ;;  %s395_s12 = sand.u32 1, %s4128_s14  }
  0x57   : > { %3511 = vmatprep.mubr.bf16.mxu0 %v422_v6  ;;  %v423_v15 = vpack.c.bf16 %v405_v12, %v404_v11  ;;  %v424_v16 = vpack.c.bf16 %v407_v14, %v406_v13  ;;  %v408_v17 = vld [vmem:[%s4385_s20 + $0x30] sm:$0xff]  ;;  %v409_v18 = vld [vmem:[%s4385_s20 + $0x38] sm:$0xff]  ;;  %v410_v19 = vld [vmem:[%s4385_s20 + $0x40] sm:$0xff]  ;;  %vm727_vm1 = vcmp.eq.s32.totalorder %v726_v50, 1  ;;  %s5383_s25 = sld [smem:[#allocation19_spill]]  ;;  %s3254_s11 = sshll.u32 %s395_s12, 7 }
  0x58   : > { %3498 = vmatpush3.bf16.msra.mxu0 %v3969_v1  ;;  %v411_v20 = vld [vmem:[%s4385_s20 + $0x48] sm:$0xff]  ;;  %v425_v21 = vpack.c.bf16 %v409_v18, %v408_v17  ;;  %v412_v23 = vld [vmem:[%s4385_s20 + $0x50] sm:$0xff]  ;;  %v413_v24 = vld [vmem:[%s4385_s20 + $0x58] sm:$0xff]  ;;  %v686_v18 = vadd.s32 16, %v4482_v4  ;;  %s5180_s9 = scalar_lea.vmem [#allocation6], %s3254_s11  ;;  %s5385_s22 = sld [smem:[#allocation20_spill]] }
  0x59   : > { %3499 = vmatprep.subr.bf16.mxu0 %v3970_v2  ;;  %v426_v22 = vpack.c.bf16 %v411_v20, %v410_v19  ;;  %v414_v25 = vld [vmem:[%s4385_s20 + $0x60] sm:$0xff]  ;;  %v415_v26 = vld [vmem:[%s4385_s20 + $0x68] sm:$0xff]  ;;  %v427_v27 = vpack.c.bf16 %v413_v24, %v412_v23  ;;  %v416_v29 = vld [vmem:[%s4385_s20 + $0x70] sm:$0xff]  ;;  %v688_v19 = vadd.s32 32, %v4482_v4  ;;  %s3156_s5 = sshll.u32 %s5180_s9, 4  ;;  %s5246_s11 = scalar_lea.sflag [#allocation5], %s395_s12  ;;  %s5239_s5 = int_to_ptr.vmem [resolvable:$true] %s3156_s5 }
  0x5a   : > { %v428_v28 = vpack.c.bf16 %v415_v26, %v414_v25  ;;  %v417_v30 = vld [vmem:[%s4385_s20 + $0x78] sm:$0xff]  ;;  %v418_v31 = vld [vmem:[%s4385_s20 + $0x80] sm:$0xff]  ;;  %v419_v32 = vld [vmem:[%s4385_s20 + $0x88] sm:$0xff]  ;;  %p5387_p3 = scmp.ne.s32.totalorder %s5339_s27, 0 }
  0x5b   : > { %v429_v33 = vpack.c.bf16 %v417_v30, %v416_v29  ;;  %v430_v34 = vpack.c.bf16 %v419_v32, %v418_v31  ;;  %v420_v35 = vld [vmem:[%s4385_s20 + $0x90] sm:$0xff]  ;;  %v421_v36 = vld [vmem:[%s4385_s20 + $0x98] sm:$0xff]  ;;  %v3976_v38 = vld [vmem:[%s5311_s4 + $0x10] sm:$0xff]   ;;  %v911_v32 = vand.u32 15, %v686_v18 }
  0x5c   : > { %3500 = vmatpush3.bf16.msra.mxu0 %v3970_v2  ;;  %v431_v37 = vpack.c.bf16 %v421_v36, %v420_v35  ;;  %v3977_v39 = vld [vmem:[%s5311_s4 + $0x18] sm:$0xff]   ;;  %v3978_v40 = vld [vmem:[%s5311_s4 + $0x30] sm:$0xff]   ;;  %v4450_v42 = vld [vmem:[%s5311_s4 + $0x40] sm:$0xff]  }
  0x5d   : > { %3501 = vmatprep.subr.bf16.mxu0 %v3971_v3  ;;  %3591 = vmatprep.subr.bf16.mxu1 %v3978_v40  ;;  %v3979_v41 = vld [vmem:[%s5311_s4 + $0x38] sm:$0xff]   ;;  %v4456_v43 = vld [vmem:[%s5311_s4] sm:$0xff]   ;;  %vm4534_vm3 = vcmp.ne.s32.totalorder %v911_v32, 0 }
  0x5e   : > { %3592 = vmatpush3.bf16.msra.mxu1 %v3978_v40  ;;  %v4463_v44 = vld [vmem:[%s5309_s2] ss:$0 sm:$0xff]  ;;  %s5386_s26 = smov %s5385_s22 }
  0x5f   : > { %3593 = vmatprep.subr.bf16.mxu1 %v3979_v41  ;;  %v4468_v46 = vld [vmem:[%s5310_s3] ss:$0 sm:$0xff] }
  0x60   : > { %3502 = vmatpush3.bf16.msra.mxu0 %v3971_v3 }
  0x61   : > { %3503 = vmatprep.subr.bf16.mxu0 %v3972_v7 }
  0x62   : > { %3594 = vmatpush3.bf16.msra.mxu1 %v3979_v41 }
  0x63   : > { %3611 = vmatprep.subr.bf16.mxu1 %v4450_v42 }
  0x64   : > { %3504 = vmatpush3.bf16.msra.mxu0 %v3972_v7 }
  0x65   : > { %3505 = vmatprep.subr.bf16.mxu0 %v3973_v8 }
  0x68   : > { %3506 = vmatpush3.bf16.msra.mxu0 %v3973_v8 }
  0x69   : > { %3507 = vmatprep.subr.bf16.mxu0 %v3974_v9 }
  0x6c   : > { %3508 = vmatpush3.bf16.msra.mxu0 %v3974_v9 }
  0x6d   : > { %3509 = vmatprep.subr.bf16.mxu0 %v3975_v10 }
  0x70   : > { %3510 = vmatpush3.bf16.msra.mxu0 %v3975_v10 }
  0x71   : > { %3531 = vmatprep.subr.bf16.mxu0 %v3976_v38 }
  0x73   : > { %3512 = vmatmul.mubr.bf16.vlgmr.msra.gmra.mrb[0].mxu0 %v423_v15  ;;  %v897_v15 = vand.u32 15, %v4482_v4 }
  0x74   : > { %3515 = vmatprep.mubr.bf16.mxu0 %v424_v16  ;;  %3532 = vmatpush3.bf16.msra.mxu0 %v3976_v38 }
  0x75   : > { %3533 = vmatprep.subr.bf16.mxu0 %v3977_v39  ;;  %vm4499_vm2 = vcmp.ne.s32.totalorder %v897_v15, 0 }
  0x78   : > { %3534 = vmatpush3.bf16.msra.mxu0 %v3977_v39 }
  0x79   : > { %3551 = vmatprep.subr.bf16.mxu0 %v4456_v43 }
  0x7b   : > { %3516 = vmatmul.mubr.bf16.gmra.mrb[4].mxu0 %v425_v21 }
  0x7c   : > { %3519 = vmatprep.mubr.bf16.mxu0 %v426_v22 }
  0x83   : > { %3520 = vmatmul.mubr.bf16.gmra.mrb[8].mxu0 %v427_v27 }
  0x84   : > { %3523 = vmatprep.mubr.bf16.mxu0 %v428_v28 }
  0x8b   : > { %3524 = vmatmul.mubr.bf16.gmra.mrb[12].mxu0 %v429_v33  ;;  %v925_v33 = vand.u32 15, %v688_v19 }
  0x8c   : > { %3527 = vmatprep.mubr.bf16.mxu0 %v430_v34 }
  0x8d   : > { %vm4538_vm4 = vcmp.ne.s32.totalorder %v925_v33, 0  ;;  %v4609_v33 = vadd.s32 80, %v4482_v4 }
  0x93   : > { %3528 = vmatmul.mubr.bf16.gmra.mrb[16].mxu0 %v431_v37 }
 0x146   : > { %v3513_v45 = vpop.f32.mrb[0].mxu0 }
 0x147   : > { %v618_v47 = vmul.f32 %v3513_v45, %v4463_v44  ;;  %v530_v48 = vpop.f32.mrb[1].mxu0 }
 0x148   : > { %v616_v49 = vmul.f32 %v4463_v44, %v530_v48  ;;  %v3514_v51 = vpop.f32.mrb[2].mxu0 }
 0x149   : > { %v645_v52 = vadd.f32 %v4468_v46, %v618_v47  ;;  %v619_v53 = vmul.f32 %v3514_v51, %v4463_v44  ;;  %v533_v54 = vpop.f32.mrb[3].mxu0 }
 0x14a   : > { %v643_v55 = vadd.f32 %v4468_v46, %v616_v49  ;;  %v617_v56 = vmul.f32 %v4463_v44, %v533_v54  ;;  %v3983_v49 = vld [vmem:[%s5311_s4 + $0x8] sm:$0xff]  }
 0x14b   : > { %v665_v57 = vmax.f32 %v645_v52, 0.0  ;;  %v646_v58 = vadd.f32 %v4468_v46, %v619_v53  ;;  %v4525_v52 = vadd.s32 48, %v4482_v4  ;;  %v4528_v53 = vadd.s32 8, %v4482_v4 }
 0x14c   : > { %v663_v60 = vmax.f32 %v643_v55, 0.0  ;;  %v644_v61 = vadd.f32 %v4468_v46, %v617_v56 }
 0x14d   : > { %875 = vst.msk [vmem:[#allocation2 + $0x18] sm:$0xff] %vm872_vm0, %v665_v57  ;;  %v666_v62 = vmax.f32 %v646_v58, 0.0 }
 0x14e   : > { %v852_v63 = vsel %vm727_vm1, %v663_v60, 0.0  ;;  %v664_v0 = vmax.f32 %v644_v61, 0.0  ;;  %v3517_v1 = vpop.f32.mrb[4].mxu0  ;;  %v4547_v61 = vadd.s32 64, %v4482_v4 }
 0x14f   : > { %873 = vst.msk [vmem:[#allocation2 + $0x8] sm:$0xff] %vm872_vm0, %v852_v63  ;;  %876 = vst.msk [vmem:[#allocation2 + $0x20] sm:$0xff] %vm872_vm0, %v666_v62  ;;  %v622_v2 = vmul.f32 %v3517_v1, %v4463_v44  ;;  %v546_v3 = vpop.f32.mrb[5].mxu0  ;;  %v4553_v62 = vld [vmem:[%s5311_s4 + $0x20] sm:$0xff]  }
 0x150   : > { %v853_v5 = vsel %vm727_vm1, %v664_v0, 0.0  ;;  %v620_v6 = vmul.f32 %v4463_v44, %v546_v3  ;;  %v3518_v7 = vpop.f32.mrb[6].mxu0 }
 0x151   : > { %874 = vst.msk [vmem:[#allocation2 + $0x10] sm:$0xff] %vm872_vm0, %v853_v5  ;;  %v649_v8 = vadd.f32 %v4468_v46, %v622_v2  ;;  %v623_v9 = vmul.f32 %v3518_v7, %v4463_v44  ;;  %v549_v10 = vpop.f32.mrb[7].mxu0 }
 0x152   : > { %v647_v11 = vadd.f32 %v4468_v46, %v620_v6  ;;  %v621_v12 = vmul.f32 %v4463_v44, %v549_v10 }
 0x153   : > { %v669_v13 = vmax.f32 %v649_v8, 0.0  ;;  %v650_v14 = vadd.f32 %v4468_v46, %v623_v9 }
 0x154   : > { %v667_v16 = vmax.f32 %v647_v11, 0.0  ;;  %v648_v17 = vadd.f32 %v4468_v46, %v621_v12  ;;  %v1227_v38 = vld [vmem:[#allocation2 + $0x18] sm:$0xff]  ;;  %v939_v11 = vand.u32 15, %v4525_v52  ;;  %v4572_v12 = vadd.s32 24, %v4482_v4 }
 0x155   : > { %879 = vst.msk [vmem:[#allocation2 + $0x38] sm:$0xff] %vm872_vm0, %v669_v13  ;;  %v670_v20 = vmax.f32 %v650_v14, 0.0 }
 0x156   : > { %877 = vst.msk [vmem:[#allocation2 + $0x28] sm:$0xff] %vm872_vm0, %v667_v16  ;;  %v668_v21 = vmax.f32 %v648_v17, 0.0  ;;  %v3521_v22 = vpop.f32.mrb[8].mxu0  ;;  %v1228_v25 = vld [vmem:[#allocation2 + $0x20] sm:$0xff]  ;;  %v1225_v29 = vld [vmem:[#allocation2 + $0x8] sm:$0xff]  ;;  %vm4623_vm5 = vcmp.ne.s32.totalorder %v939_v11, 0 }
 0x157   : > { %880 = vst.msk [vmem:[#allocation2 + $0x40] sm:$0xff] %vm872_vm0, %v670_v20  ;;  %v626_v23 = vmul.f32 %v3521_v22, %v4463_v44  ;;  %v562_v24 = vpop.f32.mrb[9].mxu0  ;;  %v4509_v39 = vld [vmem:[#allocation2 + $0x1f] sm:$0xff]  ;;  %v4516_v47 = vpack.c.bf16 %v1228_v25, %v1227_v38 }
 0x158   : > { %878 = vst.msk [vmem:[#allocation2 + $0x30] sm:$0xff] %vm872_vm0, %v668_v21  ;;  %v624_v27 = vmul.f32 %v4463_v44, %v562_v24  ;;  %v3522_v28 = vpop.f32.mrb[10].mxu0  ;;  %v1226_v30 = vld [vmem:[#allocation2 + $0x10] sm:$0xff]  ;;  %v3981_v24 = vld [vmem:[%s5311_s4 + $0x48] sm:$0xff]  }
 0x159   : > { %v4505_v31 = vld [vmem:[#allocation2 + $0x17] sm:$0xff]  ;;  %v653_v34 = vadd.f32 %v4468_v46, %v626_v23  ;;  %v627_v35 = vmul.f32 %v3522_v28, %v4463_v44  ;;  %v565_v36 = vpop.f32.mrb[11].mxu0  ;;  %v1241_v37 = vpack.c.bf16 %v1226_v30, %v1225_v29  ;;  %v953_v29 = vand.u32 15, %v4547_v61 }
 0x15a   : > { %v1752_v40 = vsel %vm4499_vm2, %v4505_v31, 0.0  ;;  %v651_v41 = vadd.f32 %v4468_v46, %v624_v27  ;;  %v625_v45 = vmul.f32 %v4463_v44, %v565_v36  ;;  %v4619_v36 = vld [vmem:[%s5311_s4 + $0x50] sm:$0xff]  }
 0x15b   : > { %v1768_v48 = vpack.c.bf16 %v4509_v39, %v1752_v40  ;;  %v673_v50 = vmax.f32 %v653_v34, 0.0  ;;  %v654_v51 = vadd.f32 %v4468_v46, %v627_v35  ;;  %3535 = vmatprep.mubr.msk.bf16.mxu0 %vm872_vm0, %v1241_v37  ;;  %vm4638_vm6 = vcmp.ne.s32.totalorder %v953_v29, 0 }
 0x15c   : > { %v671_v54 = vmax.f32 %v651_v41, 0.0  ;;  %v652_v55 = vadd.f32 %v4468_v46, %v625_v45  ;;  %3536 = vmatmul.mubr.msk.bf16.vlgmr.msra.gmra.mrb[20].mxu0 %vm872_vm0, %v4516_v47  ;;  %v1231_v60 = vld [vmem:[#allocation2 + $0x38] sm:$0xff]  ;;  %v918_v41 = vand.u32 15, %v4572_v12  ;;  %v4631_v45 = vadd.s32 40, %v4482_v4 }
 0x15d   : > { %3595 = vmatprep.mubr.msk.bf16.mxu1 %vm872_vm0, %v1768_v48  ;;  %883 = vst.msk [vmem:[#allocation2 + $0x58] sm:$0xff] %vm872_vm0, %v673_v50  ;;  %v674_v58 = vmax.f32 %v654_v51, 0.0  ;;  %v4543_v59 = vld [vmem:[#allocation2 + $0x27] sm:$0xff]  ;;  %3552 = vmatpush3.bf16.msra.mxu0 %v4456_v43  ;;  %v770_v50 = vstv %s4603_s24  ;;  %s3376_s24 = sshll.u32 %s4148_s19, 4 }
 0x15e   : > { %881 = vst.msk [vmem:[#allocation2 + $0x48] sm:$0xff] %vm872_vm0, %v671_v54  ;;  %v672_v63 = vmax.f32 %v652_v55, 0.0  ;;  %v2303_v0 = vsel %vm4499_vm2, %v4543_v59, 0.0  ;;  %v3525_v1 = vpop.f32.mrb[12].mxu0  ;;  %v1229_v2 = vld [vmem:[#allocation2 + $0x28] sm:$0xff]  ;;  %v1754_v3 = vsel %vm4534_vm3, %v4543_v59, 0.0  ;;  %3553 = vmatprep.subr.bf16.mxu0 %v3983_v49 }
 0x15f   : > { %v1232_v5 = vld [vmem:[#allocation2 + $0x40] sm:$0xff]  ;;  %884 = vst.msk [vmem:[#allocation2 + $0x60] sm:$0xff] %vm872_vm0, %v674_v58  ;;  %v630_v43 = vmul.f32 %v3525_v1, %v4463_v44  ;;  %v578_v6 = vpop.f32.mrb[13].mxu0  ;;  %v1230_v7 = vld [vmem:[#allocation2 + $0x30] sm:$0xff]  ;;  %v967_v1 = vand.u32 15, %v4609_v33  ;;  %vm4662_vm7 = vcmp.eq.s32.totalorder %v770_v50, 1 }
 0x160   : > { %v4564_v8 = vld [vmem:[#allocation2 + $0x2f] sm:$0xff]  ;;  %v4566_v9 = vld [vmem:[#allocation2 + $0x37] sm:$0xff]  ;;  %v4568_v10 = vpack.c.bf16 %v1232_v5, %v1231_v60  ;;  %882 = vst.msk [vmem:[#allocation2 + $0x50] sm:$0xff] %vm872_vm0, %v672_v63  ;;  %v628_v13 = vmul.f32 %v4463_v44, %v578_v6  ;;  %v3526_v14 = vpop.f32.mrb[14].mxu0  ;;  %v4576_v15 = vpack.c.bf16 %v1230_v7, %v1229_v2  ;;  %v4579_v17 = vld [vmem:[#allocation2 + $0x3f] sm:$0xff]  ;;  %v696_v2 = vadd.s32 96, %v4482_v4 }
 0x161   : > { %v1769_v16 = vpack.c.bf16 %v4564_v8, %v1754_v3  ;;  %v2305_v18 = vsel %vm4534_vm3, %v4566_v9, 0.0  ;;  %v657_v19 = vadd.f32 %v4468_v46, %v630_v43  ;;  %v631_v20 = vmul.f32 %v3526_v14, %v4463_v44  ;;  %v581_v21 = vpop.f32.mrb[15].mxu0  ;;  %3554 = vmatpush3.bf16.msra.mxu0 %v3983_v49  ;;  %v4772_v26 = vld [vmem:[#allocation2 + $0x29] sm:$0xff] }
 0x162   : > { %v4587_v22 = vpack.c.bf16 %v4579_v17, %v2305_v18  ;;  %v1756_v23 = vsel %vm4538_vm4, %v4566_v9, 0.0  ;;  %v655_v25 = vadd.f32 %v4468_v46, %v628_v13  ;;  %v629_v27 = vmul.f32 %v4463_v44, %v581_v21  ;;  %3539 = vmatprep.mubr.msk.bf16.mxu0 %vm872_vm0, %v4576_v15  ;;  %3571 = vmatprep.subr.bf16.mxu0 %v4553_v62  ;;  %v1154_v13 = vld [vmem:[#allocation2 + $0xf] sm:$0xff] }
 0x163   : > { %3596 = vmatmul.mubr.msk.bf16.vlgmr.msra.gmra.mrb[0].mxu1 %vm872_vm0, %v1769_v16  ;;  %v1770_v28 = vpack.c.bf16 %v4579_v17, %v1756_v23  ;;  %v677_v30 = vmax.f32 %v657_v19, 0.0  ;;  %v658_v32 = vadd.f32 %v4468_v46, %v631_v20  ;;  %v4687_v33 = vadd.s32 56, %v4482_v4 }
 0x164   : > { %3612 = vmatpush3.bf16.msra.mxu1 %v4450_v42  ;;  %v675_v34 = vmax.f32 %v655_v25, 0.0  ;;  %v656_v35 = vadd.f32 %v4468_v46, %v629_v27  ;;  %3540 = vmatmul.mubr.msk.bf16.gmra.mrb[24].mxu0 %vm872_vm0, %v4568_v10  ;;  %v904_v42 = vand.u32 15, %v4528_v53  ;;  %v1235_v19 = vld [vmem:[#allocation2 + $0x58] sm:$0xff]  ;;  %vm4691_vm9 = vcmp.ne.s32.totalorder %v967_v1, 0 }
 0x165   : > { %3599 = vmatprep.mubr.msk.bf16.mxu1 %vm872_vm0, %v1770_v28  ;;  %887 = vst.msk [vmem:[#allocation2 + $0x78] sm:$0xff] %vm872_vm0, %v677_v30  ;;  %v678_v37 = vmax.f32 %v658_v32, 0.0  ;;  %v4627_v40 = vld [vmem:[#allocation2 + $0x47] sm:$0xff]  ;;  %3613 = vmatprep.subr.bf16.mxu1 %v3981_v24  ;;  %v981_v28 = vand.u32 15, %v696_v2  ;;  %v932_v32 = vand.u32 15, %v4631_v45  ;;  %vm4705_vm10 = vcmp.ne.s32.totalorder %v918_v41, 15 }
 0x166   : > { %885 = vst.msk [vmem:[#allocation2 + $0x68] sm:$0xff] %vm872_vm0, %v675_v34  ;;  %v676_v48 = vmax.f32 %v656_v35, 0.0  ;;  %v3529_v49 = vpop.f32.mrb[16].mxu0  ;;  %v1233_v51 = vld [vmem:[#allocation2 + $0x48] sm:$0xff]  ;;  %v1758_v52 = vsel %vm4623_vm5, %v4627_v40, 0.0  ;;  %v1236_v54 = vld [vmem:[#allocation2 + $0x60] sm:$0xff] }
 0x167   : > { %888 = vst.msk [vmem:[#allocation2 + $0x80] sm:$0xff] %vm872_vm0, %v678_v37  ;;  %v634_v55 = vmul.f32 %v3529_v49, %v4463_v44  ;;  %v594_v58 = vpop.f32.mrb[17].mxu0  ;;  %v1234_v60 = vld [vmem:[#allocation2 + $0x50] sm:$0xff]  ;;  %v4655_v7 = vld [vmem:[#allocation2 + $0x5f] sm:$0xff]  ;;  %v4673_v23 = vpack.c.bf16 %v1236_v54, %v1235_v19  ;;  %vm4681_vm8 = vcmp.ne.s32.totalorder %v904_v42, 15  ;;  %v1153_v34 = vld [vmem:[#allocation2 + $0x7] sm:$0xff] }
 0x168   : > { %v4644_v61 = vld [vmem:[#allocation2 + $0x4f] sm:$0xff]  ;;  %v4646_v63 = vld [vmem:[#allocation2 + $0x57] sm:$0xff]  ;;  %3614 = vmatpush3.bf16.msra.mxu1 %v3981_v24  ;;  %886 = vst.msk [vmem:[#allocation2 + $0x70] sm:$0xff] %vm872_vm0, %v676_v48  ;;  %v632_v3 = vmul.f32 %v4463_v44, %v594_v58  ;;  %v3530_v5 = vpop.f32.mrb[18].mxu0  ;;  %v4652_v43 = vpack.c.bf16 %v1234_v60, %v1233_v51  ;;  %v698_v24 = vadd.s32 112, %v4482_v4  ;;  %v4698_v42 = vadd.s32 72, %v4482_v4 }
 0x169   : > { %v1771_v6 = vpack.c.bf16 %v4644_v61, %v1758_v52  ;;  %v1760_v11 = vsel %vm4638_vm6, %v4646_v63, 0.0  ;;  %3631 = vmatprep.subr.bf16.mxu1 %v4619_v36  ;;  %v661_v12 = vadd.f32 %v4468_v46, %v634_v55  ;;  %v635_v14 = vmul.f32 %v3530_v5, %v4463_v44  ;;  %v597_v16 = vpop.f32.mrb[19].mxu0  ;;  %v1516_v53 = vld [vmem:[#allocation2 + $0x11] sm:$0xff] }
 0x16a   : > { %v1772_v18 = vpack.c.bf16 %v4655_v7, %v1760_v11  ;;  %v659_v20 = vadd.f32 %v4468_v46, %v632_v3  ;;  %v633_v21 = vmul.f32 %v4463_v44, %v597_v16  ;;  %3543 = vmatprep.mubr.msk.bf16.mxu0 %vm872_vm0, %v4652_v43  ;;  %v995_v52 = vand.u32 15, %v698_v24 }
 0x16b   : > { %3600 = vmatmul.mubr.msk.bf16.gmra.mrb[4].mxu1 %vm872_vm0, %v1771_v6  ;;  %v681_v25 = vmax.f32 %v661_v12, 0.0  ;;  %v662_v27 = vadd.f32 %v4468_v46, %v635_v14  ;;  %vm4713_vm11 = vcmp.ne.s32.totalorder %v981_v28, 0  ;;  %v4720_v3 = vadd.s32 88, %v4482_v4 }
 0x16c   : > { %3603 = vmatprep.mubr.msk.bf16.mxu1 %vm872_vm0, %v1772_v18  ;;  %v679_v29 = vmax.f32 %v659_v20, 0.0  ;;  %v660_v30 = vadd.f32 %v4468_v46, %v633_v21  ;;  %3544 = vmatmul.mubr.msk.bf16.gmra.mrb[28].mxu0 %vm872_vm0, %v4673_v23  ;;  %v1201_v41 = vsel %vm4499_vm2, %v1153_v34, 0.0  ;;  %v1239_v16 = vld [vmem:[#allocation2 + $0x78] sm:$0xff]  ;;  %vm4735_vm12 = vcmp.ne.s32.totalorder %v932_v32, 15 }
 0x16d   : > { %v870_v35 = vsel %vm4662_vm7, %v681_v25, 0.0  ;;  %v682_v37 = vmax.f32 %v662_v27, 0.0  ;;  %v4695_v46 = vld [vmem:[#allocation2 + $0x67] sm:$0xff]  ;;  %v946_v19 = vand.u32 15, %v4687_v33  ;;  %v960_v20 = vand.u32 15, %v4698_v42  ;;  %v4750_v25 = vld [vmem:[#allocation2 + $0x31] sm:$0xff] }
 0x16e   : > { %891 = vst.msk [vmem:[#allocation2 + $0x98] sm:$0xff] %vm872_vm0, %v870_v35  ;;  %889 = vst.msk [vmem:[#allocation2 + $0x88] sm:$0xff] %vm872_vm0, %v679_v29  ;;  %v680_v45 = vmax.f32 %v660_v30, 0.0  ;;  %v1237_v49 = vld [vmem:[#allocation2 + $0x68] sm:$0xff]  ;;  %v1762_v50 = vsel %vm4691_vm9, %v4695_v46, 0.0  ;;  %v1240_v51 = vld [vmem:[#allocation2 + $0x80] sm:$0xff]  ;;  %v4760_v29 = vpack.c.bf16 %v4564_v8, %v2303_v0  ;;  %v1217_v30 = vpack.c.bf16 %v1154_v13, %v1201_v41 }
 0x16f   : > { %v871_v55 = vsel %vm4662_vm7, %v682_v37, 0.0  ;;  %v1238_v58 = vld [vmem:[#allocation2 + $0x70] sm:$0xff]  ;;  %v4729_v11 = vld [vmem:[#allocation2 + $0x7f] sm:$0xff]  ;;  %v4744_v21 = vpack.c.bf16 %v1240_v51, %v1239_v16  ;;  %vm4746_vm13 = vcmp.ne.s32.totalorder %v995_v52, 0  ;;  %v697_v28 = vadd.s32 104, %v4482_v4 }
 0x170   : > { %v4711_v60 = vld [vmem:[#allocation2 + $0x6f] sm:$0xff]  ;;  %v4717_v2 = vld [vmem:[#allocation2 + $0x77] sm:$0xff]  ;;  %892 = vst.msk [vmem:[#allocation2 + $0xa0] sm:$0xff] %vm872_vm0, %v871_v55  ;;  %890 = vst.msk [vmem:[#allocation2 + $0x90] sm:$0xff] %vm872_vm0, %v680_v45  ;;  %v4726_v5 = vpack.c.bf16 %v1238_v58, %v1237_v49  ;;  %v974_v32 = vand.u32 15, %v4720_v3  ;;  %v2307_v33 = vsel %vm4538_vm4, %v4627_v40, 0.0 }
 0x171   : > { %v1773_v6 = vpack.c.bf16 %v4711_v60, %v1762_v50  ;;  %v1764_v12 = vsel %vm4713_vm11, %v4717_v2, 0.0  ;;  %v4752_v27 = vld [vmem:[#allocation2 + $0x41] sm:$0xff]  ;;  %v2309_v34 = vsel %vm4623_vm5, %v4646_v63, 0.0  ;;  %v4775_v0 = vpack.c.bf16 %v4644_v61, %v2307_v33  ;;  %v4787_v49 = vld [vmem:[#allocation2 + $0x51] sm:$0xff]  ;;  %v4803_v3 = vld [vmem:[#allocation2 + $0x39] sm:$0xff] }
 0x172   : > { %v1774_v14 = vpack.c.bf16 %v4729_v11, %v1764_v12  ;;  %3547 = vmatprep.mubr.msk.bf16.mxu0 %vm872_vm0, %v4726_v5  ;;  %v4778_v35 = vpack.c.bf16 %v4655_v7, %v2309_v34  ;;  %v2311_v37 = vsel %vm4638_vm6, %v4695_v46, 0.0  ;;  %v2313_v42 = vsel %vm4691_vm9, %v4717_v2, 0.0  ;;  %v4805_v41 = vld [vmem:[#allocation2 + $0x49] sm:$0xff] }
 0x173   : > { %3604 = vmatmul.mubr.msk.bf16.gmra.mrb[8].mxu1 %vm872_vm0, %v1773_v6  ;;  %v4790_v50 = vpack.c.bf16 %v4711_v60, %v2311_v37  ;;  %v4793_v51 = vpack.c.bf16 %v4729_v11, %v2313_v42  ;;  %v2666_v52 = vsel %vm4681_vm8, %v4750_v25, 0.0  ;;  %v2668_v55 = vsel %vm4705_vm10, %v4752_v27, 0.0  ;;  %v4807_v6 = vld [vmem:[#allocation2 + $0x61] sm:$0xff]  ;;  %v4827_v42 = vld [vmem:[#allocation2 + $0x71] sm:$0xff]  ;;  %v4844_v57 = vld [vmem:[#allocation2 + $0x69] sm:$0xff] }
 0x174   : > { %3607 = vmatprep.mubr.msk.bf16.mxu1 %vm872_vm0, %v1774_v14  ;;  %3548 = vmatmul.mubr.msk.bf16.gmra.mrb[32].mxu0 %vm872_vm0, %v4744_v21  ;;  %v988_v12 = vand.u32 15, %v697_v28  ;;  %v1203_v14 = vsel %vm4534_vm3, %v4505_v31, 0.0  ;;  %vm4814_vm14 = vcmp.ne.s32.totalorder %v946_v19, 15  ;;  %v4819_v33 = vpack.c.bf16 %v2666_v52, %v4772_v26 }
 0x175   : > { %3555 = vmatprep.mubr.msk.bf16.mxu0 %vm872_vm0, %v1217_v30  ;;  %v1750_v45 = vld [vmem:[#allocation2 + $0x87] sm:$0xff]  ;;  %v4822_v34 = vpack.c.bf16 %v2668_v55, %v4803_v3  ;;  %v1205_v28 = vsel %vm4538_vm4, %v4543_v59, 0.0  ;;  %vm4838_vm15 = vcmp.ne.s32.totalorder %v960_v20, 15  ;;  %v4842_v55 = vld [vmem:[#allocation2 + $0x59] sm:$0xff]  ;;  %vm4859_vm1 = vcmp.ne.s32.totalorder %v974_v32, 15 }
 0x176   : > { %v1766_v58 = vsel %vm4746_vm13, %v1750_v45, 0.0  ;;  %v2315_v13 = vsel %vm4713_vm11, %v1750_v45, 0.0  ;;  %5368 = vst [vmem:[#allocation14_spill] sm:$0xff] %v4819_v33  ;;  %v4829_v56 = vld [vmem:[#allocation2 + $0x81] sm:$0xff]  ;;  %v2670_v45 = vsel %vm4735_vm12, %v4787_v49, 0.0  ;;  %vm4863_vm2 = vcmp.ne.s32.totalorder %v988_v12, 15 }
 0x177   : > { %v1751_v16 = vld [vmem:[#allocation2 + $0x8f] sm:$0xff]  ;;  %5369 = vst [vmem:[#allocation15_spill] sm:$0xff] %v4822_v34  ;;  %v2674_v32 = vsel %vm4838_vm15, %v4827_v42, 0.0  ;;  %v2676_v12 = vsel %vm4859_vm1, %v4829_v56, 0.0  ;;  %v1564_v48 = vsel %vm4681_vm8, %v1516_v53, 0.0  ;;  %v1574_v53 = vsel %vm4859_vm1, %v4807_v6, 0.0 }
 0x178   : > { %v1775_v37 = vpack.c.bf16 %v1751_v16, %v1766_v58  ;;  %v4831_v31 = vld [vmem:[#allocation2 + $0x91] sm:$0xff]  ;;  %v4833_v19 = vpack.c.bf16 %v1751_v16, %v2315_v13  ;;  %v4846_v59 = vld [vmem:[#allocation2 + $0x89] sm:$0xff]  ;;  %v4849_v58 = vpack.c.bf16 %v2670_v45, %v4805_v41  ;;  %v2672_v13 = vsel %vm4814_vm14, %v4807_v6, 0.0 }
 0x179   : > { %v1218_v16 = vpack.c.bf16 %v4509_v39, %v1203_v14  ;;  %v3987_v20 = vld [vmem:[%s5311_s4 + $0x28] sm:$0xff]   ;;  %v4868_v45 = vpack.c.bf16 %v2672_v13, %v4842_v55  ;;  %v1219_v39 = vpack.c.bf16 %v4564_v8, %v1205_v28  ;;  %v4873_v14 = vld [vmem:[#allocation2 + $0x79] sm:$0xff]  ;;  %v1207_v13 = vsel %vm4623_vm5, %v4566_v9, 0.0  ;;  %v1940_v1 = vld [vmem:[#allocation2 + $0x90] sm:$0xff] }
 0x17a   : > { %v4889_v8 = vpack.c.bf16 %v2676_v12, %v4873_v14  ;;  %v3988_v9 = vld [vmem:[%s5311_s4 + $0x60] sm:$0xff]  }
 0x17b   : > { %3608 = vmatmul.mubr.msk.bf16.gmra.mrb[12].mxu1 %vm872_vm0, %v1775_v37  ;;  %v2678_v37 = vsel %vm4863_vm2, %v4831_v31, 0.0 }
 0x17c   : > { %3615 = vmatprep.mubr.msk.bf16.mxu1 %vm872_vm0, %v4516_v47  ;;  %3556 = vmatmul.mubr.msk.bf16.vlgmr.msra.gmra.mrb[20].mxu0 %vm872_vm0, %v1218_v16  ;;  %v4886_v47 = vpack.c.bf16 %v2674_v32, %v4844_v57  ;;  %v4892_v28 = vpack.c.bf16 %v2678_v37, %v4846_v59  ;;  %v1209_v16 = vsel %vm4638_vm6, %v4627_v40, 0.0  ;;  %v3985_v32 = vld [vmem:[%s5311_s4 + $0x58] sm:$0xff]  }
 0x17d   : > { %3559 = vmatprep.mubr.msk.bf16.mxu0 %vm872_vm0, %v1219_v39  ;;  %3572 = vmatpush3.bf16.msra.mxu0 %v4553_v62  ;;  %v1220_v39 = vpack.c.bf16 %v4579_v17, %v1207_v13  ;;  %v1221_v62 = vpack.c.bf16 %v4644_v61, %v1209_v16  ;;  %v1211_v17 = vsel %vm4691_vm9, %v4646_v63, 0.0  ;;  %v1215_v61 = vsel %vm4746_vm13, %v4717_v2, 0.0  ;;  %v1515_v63 = vld [vmem:[#allocation2 + $0x9] sm:$0xff] }
 0x17e   : > { %3573 = vmatprep.subr.bf16.mxu0 %v3987_v20  ;;  %v1222_v38 = vpack.c.bf16 %v4655_v7, %v1211_v17  ;;  %v1224_v7 = vpack.c.bf16 %v4729_v11, %v1215_v61  ;;  %v2098_v11 = vld [vmem:[#allocation2 + $0x19] sm:$0xff]  ;;  %v1568_v13 = vsel %vm4735_vm12, %v4750_v25, 0.0  ;;  %v1570_v17 = vsel %vm4814_vm14, %v4752_v27, 0.0 }
 0x17f   : > { %v1581_v44 = vpack.c.bf16 %v1568_v13, %v4772_v26  ;;  %v1582_v18 = vpack.c.bf16 %v1570_v17, %v4803_v3  ;;  %v1576_v61 = vsel %vm4863_vm2, %v4827_v42, 0.0 }
 0x180   : > { %v1585_v52 = vpack.c.bf16 %v1576_v61, %v4844_v57 }
 0x181   : > { %3574 = vmatpush3.bf16.msra.mxu0 %v3987_v20  ;;  %v1939_v20 = vld [vmem:[#allocation2 + $0x88] sm:$0xff] }
 0x182   : > { %v4947_v37 = vpack.c.bf16 %v1940_v1, %v1939_v20 }
 0x183   : > { %3616 = vmatmul.mubr.msk.bf16.vlgmr.msra.gmra.mrb[0].mxu1 %vm872_vm0, %v4576_v15 }
 0x184   : > { %3632 = vmatpush3.bf16.msra.mxu1 %v4619_v36  ;;  %3619 = vmatprep.mubr.msk.bf16.mxu1 %vm872_vm0, %v4568_v10  ;;  %v1213_v36 = vsel %vm4713_vm11, %v4695_v46, 0.0  ;;  %v1579_v46 = vpack.c.bf16 %v1564_v48, %v1515_v63 }
 0x185   : > { %3560 = vmatmul.mubr.msk.bf16.gmra.mrb[24].mxu0 %vm872_vm0, %v1220_v39  ;;  %3633 = vmatprep.subr.bf16.mxu1 %v3985_v32  ;;  %v1223_v40 = vpack.c.bf16 %v4711_v60, %v1213_v36  ;;  %v2099_v60 = vld [vmem:[#allocation2 + $0x21] sm:$0xff]  ;;  %v2117_v39 = vsel %vm4705_vm10, %v4750_v25, 0.0 }
 0x186   : > { %3563 = vmatprep.mubr.msk.bf16.mxu0 %vm872_vm0, %v1221_v62  ;;  %v2115_v2 = vsel %vm4681_vm8, %v2099_v60, 0.0  ;;  %v1566_v12 = vsel %vm4705_vm10, %v2099_v60, 0.0  ;;  %v2119_v62 = vsel %vm4735_vm12, %v4752_v27, 0.0  ;;  %v2131_v36 = vpack.c.bf16 %v2117_v39, %v4772_v26  ;;  %v3990_v26 = vld [vmem:[%s5311_s4 + $0x70] sm:$0xff]   ;;  %v5104_v39 = vld [vmem:[%s5380_s30] ss:$0 sm:$0xff] }
 0x187   : > { %v2130_v16 = vpack.c.bf16 %v2115_v2, %v2098_v11  ;;  %v2132_v54 = vpack.c.bf16 %v2119_v62, %v4803_v3  ;;  %v699_v27 = vadd.s32 120, %v4482_v4  ;;  %v2121_v3 = vsel %vm4814_vm14, %v4787_v49, 0.0  ;;  %s5384_s30 = sld [smem:[#allocation9_spill]] }
 0x188   : > { %3634 = vmatpush3.bf16.msra.mxu1 %v3985_v32  ;;  %v1580_v32 = vpack.c.bf16 %v1566_v12, %v2098_v11  ;;  %v2133_v4 = vpack.c.bf16 %v2121_v3, %v4805_v41 }
 0x189   : > { %3651 = vmatprep.subr.bf16.mxu1 %v3988_v9  ;;  %v1002_v63 = vand.u32 15, %v699_v27 }
 0x18b   : > { %3620 = vmatmul.mubr.msk.bf16.gmra.mrb[4].mxu1 %vm872_vm0, %v4652_v43  ;;  %vm5004_vm3 = vcmp.ne.s32.totalorder %v1002_v63, 15 }
 0x18c   : > { %3623 = vmatprep.mubr.msk.bf16.mxu1 %vm872_vm0, %v4673_v23  ;;  %v1578_v48 = vsel %vm5004_vm3, %v4829_v56, 0.0  ;;  %v2129_v33 = vsel %vm5004_vm3, %v4831_v31, 0.0 }
 0x18d   : > { %3564 = vmatmul.mubr.msk.bf16.gmra.mrb[28].mxu0 %vm872_vm0, %v1222_v38  ;;  %v1572_v38 = vsel %vm4838_vm15, %v4787_v49, 0.0  ;;  %v1584_v49 = vpack.c.bf16 %v1574_v53, %v4842_v55  ;;  %v1586_v60 = vpack.c.bf16 %v1578_v48, %v4873_v14  ;;  %v2137_v34 = vpack.c.bf16 %v2129_v33, %v4846_v59  ;;  %s3372_s21 = sshll.u32 %s5384_s30, 5  ;;  %s4169_s30 = smov [#allocation6]  }
 0x18e   : > { %3567 = vmatprep.mubr.msk.bf16.mxu0 %vm872_vm0, %v1223_v40  ;;  %v3989_v40 = vld [vmem:[%s5311_s4 + $0x68] sm:$0xff]   ;;  %v1583_v25 = vpack.c.bf16 %v1572_v38, %v4805_v41  ;;  %s3153_s19 = sadd.s32 %s3376_s24, %s3372_s21  ;;  %s4046_s24 = sshll.u32 %s4169_s30, 4  ;;  %s4047_s24 = int_to_ptr.vmem [resolvable:$false] %s4046_s24 }
 0x18f   : > { %s4048_s21 = scalar_lea.vmem %s4047_s24, 4096  ;;  %p4049_p4 = scmp.lt.s32.totalorder %s5239_s5, %s4047_s24 }
 0x193   : > { %3624 = vmatmul.mubr.msk.bf16.gmra.mrb[8].mxu1 %vm872_vm0, %v4726_v5 }
 0x194   : > { %3627 = vmatprep.mubr.msk.bf16.mxu1 %vm872_vm0, %v4744_v21 }
 0x195   : > { %3568 = vmatmul.mubr.msk.bf16.gmra.mrb[32].mxu0 %vm872_vm0, %v1224_v7 }
 0x196   : > { %3575 = vmatprep.mubr.msk.bf16.mxu0 %vm872_vm0, %v1579_v46 }
 0x19b   : > { %3628 = vmatmul.mubr.msk.bf16.gmra.mrb[12].mxu1 %vm872_vm0, %v4947_v37 }
 0x19c   : > { %3635 = vmatprep.mubr.msk.bf16.mxu1 %vm872_vm0, %v2130_v16 }
 0x19d   : > { %3576 = vmatmul.mubr.msk.bf16.vlgmr.msra.gmra.mrb[20].mxu0 %vm872_vm0, %v1580_v32 }
 0x19e   : > { %3579 = vmatprep.mubr.msk.bf16.mxu0 %vm872_vm0, %v1581_v44 }
 0x1a3   : > { %3636 = vmatmul.mubr.msk.bf16.vlgmr.msra.gmra.mrb[0].mxu1 %vm872_vm0, %v2131_v36  ;;  %v5109_v36 = vld [vmem:[%s5381_s16] ss:$0 sm:$0xff]  ;;  %s3373_s16 = sshll.u32 %s3153_s19, 7 }
 0x1a4   : > { %3652 = vmatpush3.bf16.msra.mxu1 %v3988_v9  ;;  %3639 = vmatprep.mubr.msk.bf16.mxu1 %vm872_vm0, %v2132_v54  ;;  %v2123_v9 = vsel %vm4838_vm15, %v4807_v6, 0.0  ;;  %v2125_v6 = vsel %vm4859_vm1, %v4827_v42, 0.0  ;;  %v3991_v42 = vld [vmem:[%s5311_s4 + $0x78] sm:$0xff]  }
 0x1a5   : > { %3580 = vmatmul.mubr.msk.bf16.gmra.mrb[24].mxu0 %vm872_vm0, %v1582_v18  ;;  %3653 = vmatprep.subr.bf16.mxu1 %v3989_v40  ;;  %v2134_v30 = vpack.c.bf16 %v2123_v9, %v4842_v55  ;;  %v2127_v55 = vsel %vm4863_vm2, %v4829_v56, 0.0  ;;  %v2135_v7 = vpack.c.bf16 %v2125_v6, %v4844_v57  ;;  %v3992_v56 = vld [vmem:[%s5311_s4 + $0x80] sm:$0xff]  }
 0x1a6   : > { %3583 = vmatprep.mubr.msk.bf16.mxu0 %vm872_vm0, %v1583_v25  ;;  %v2136_v46 = vpack.c.bf16 %v2127_v55, %v4873_v14 }
 0x1a8   : > { %3654 = vmatpush3.bf16.msra.mxu1 %v3989_v40 }
 0x1a9   : > { %3671 = vmatprep.subr.bf16.mxu1 %v3990_v26 }
 0x1ab   : > { %3640 = vmatmul.mubr.msk.bf16.gmra.mrb[4].mxu1 %vm872_vm0, %v2133_v4 }
 0x1ac   : > { %3643 = vmatprep.mubr.msk.bf16.mxu1 %vm872_vm0, %v2134_v30 }
 0x1ad   : > { %3584 = vmatmul.mubr.msk.bf16.gmra.mrb[28].mxu0 %vm872_vm0, %v1584_v49 }
 0x1ae   : > { %3587 = vmatprep.mubr.msk.bf16.mxu0 %vm872_vm0, %v1585_v52 }
 0x1b3   : > { %3644 = vmatmul.mubr.msk.bf16.gmra.mrb[8].mxu1 %vm872_vm0, %v2135_v7 }
 0x1b4   : > { %3647 = vmatprep.mubr.msk.bf16.mxu1 %vm872_vm0, %v2136_v46 }
 0x1b5   : > { %3588 = vmatmul.mubr.msk.bf16.gmra.mrb[32].mxu0 %vm872_vm0, %v1586_v60 }
 0x1bb   : > { %3648 = vmatmul.mubr.msk.bf16.gmra.mrb[12].mxu1 %vm872_vm0, %v2137_v34 }
 0x1bc   : > { %3655 = vmatprep.mubr.msk.bf16.mxu1 %vm872_vm0, %v4760_v29  ;;  %v2302_v29 = vld [vmem:[#allocation2 + $0x9f] sm:$0xff] }
 0x1c3   : > { %3656 = vmatmul.mubr.msk.bf16.vlgmr.msra.gmra.mrb[0].mxu1 %vm872_vm0, %v4587_v22  ;;  %v2301_v22 = vld [vmem:[#allocation2 + $0x97] sm:$0xff] }
 0x1c4   : > { %3672 = vmatpush3.bf16.msra.mxu1 %v3990_v26  ;;  %3659 = vmatprep.mubr.msk.bf16.mxu1 %vm872_vm0, %v4775_v0  ;;  %v2317_v0 = vsel %vm4746_vm13, %v2301_v22, 0.0 }
 0x1c5   : > { %3673 = vmatprep.subr.bf16.mxu1 %v3991_v42  ;;  %v2326_v31 = vpack.c.bf16 %v2302_v29, %v2317_v0 }
 0x1c8   : > { %3674 = vmatpush3.bf16.msra.mxu1 %v3991_v42 }
 0x1c9   : > { %3691 = vmatprep.subr.bf16.mxu1 %v3992_v56 }
 0x1cb   : > { %3660 = vmatmul.mubr.msk.bf16.gmra.mrb[4].mxu1 %vm872_vm0, %v4778_v35  ;;  %v3993_v35 = vld [vmem:[%s5311_s4 + $0x88] sm:$0xff]  }
 0x1cc   : > { %3663 = vmatprep.mubr.msk.bf16.mxu1 %vm872_vm0, %v4790_v50  ;;  %v5379_v50 = vld [vmem:[#allocation15_spill] sm:$0xff] }
 0x1d3   : > { %3664 = vmatmul.mubr.msk.bf16.gmra.mrb[8].mxu1 %vm872_vm0, %v4793_v51  ;;  %v2663_v51 = vld [vmem:[#allocation2 + $0x99] sm:$0xff] }
 0x1d4   : > { %3667 = vmatprep.mubr.msk.bf16.mxu1 %vm872_vm0, %v4833_v19 }
 0x1db   : > { %3668 = vmatmul.mubr.msk.bf16.gmra.mrb[12].mxu1 %vm872_vm0, %v2326_v31 }
 0x1dc   : > { %3675 = vmatprep.mubr.msk.bf16.mxu1 %vm872_vm0, %v4576_v15  ;;  %v2491_v15 = vld [vmem:[#allocation2 + $0xa0] sm:$0xff] }
 0x1e3   : > { %3676 = vmatmul.mubr.msk.bf16.vlgmr.msra.gmra.mrb[0].mxu1 %vm872_vm0, %v4568_v10  ;;  %v2490_v10 = vld [vmem:[#allocation2 + $0x98] sm:$0xff] }
 0x1e4   : > { %3692 = vmatpush3.bf16.msra.mxu1 %v3992_v56  ;;  %3679 = vmatprep.mubr.msk.bf16.mxu1 %vm872_vm0, %v4652_v43  ;;  %v2499_v24 = vpack.c.bf16 %v2491_v15, %v2490_v10  ;;  %v5378_v43 = vld [vmem:[#allocation14_spill] sm:$0xff] }
 0x1e5   : > { %3693 = vmatprep.subr.bf16.mxu1 %v3993_v35 }
 0x1e8   : > { %3694 = vmatpush3.bf16.msra.mxu1 %v3993_v35 }
 0x1eb   : > { %3680 = vmatmul.mubr.msk.bf16.gmra.mrb[4].mxu1 %vm872_vm0, %v4673_v23  ;;  %v3994_v23 = vld [vmem:[%s5314_s7] sm:$0xff]  }
 0x1ec   : > { %3683 = vmatprep.mubr.msk.bf16.mxu1 %vm872_vm0, %v4726_v5  ;;  %v3995_v5 = vld [vmem:[%s5314_s7 + $0x8] sm:$0xff]   ;;  %3711 = vmatprep.subr.bf16.mxu0 %v3994_v23 }
 0x1ed   : > { %3712 = vmatpush3.bf16.msra.mxu0 %v3994_v23 }
 0x1ee   : > { %3713 = vmatprep.subr.bf16.mxu0 %v3995_v5 }
 0x1f1   : > { %3714 = vmatpush3.bf16.msra.mxu0 %v3995_v5 }
 0x1f3   : > { %3684 = vmatmul.mubr.msk.bf16.gmra.mrb[8].mxu1 %vm872_vm0, %v4744_v21  ;;  %v2664_v21 = vld [vmem:[#allocation2 + $0xa1] sm:$0xff] }
 0x1f4   : > { %3687 = vmatprep.mubr.msk.bf16.mxu1 %vm872_vm0, %v4947_v37  ;;  %v2680_v19 = vsel %vm5004_vm3, %v2664_v21, 0.0 }
 0x1f5   : > { %v2688_v57 = vpack.c.bf16 %v2680_v19, %v2663_v51 }
 0x1fb   : > { %3688 = vmatmul.mubr.msk.bf16.gmra.mrb[12].mxu1 %vm872_vm0, %v2499_v24 }
 0x1fc   : > { %3695 = vmatprep.mubr.msk.bf16.mxu1 %vm872_vm0, %v5378_v43 }
 0x203   : > { %3696 = vmatmul.mubr.msk.bf16.vlgmr.msra.gmra.mrb[0].mxu1 %vm872_vm0, %v5379_v50 }
 0x204   : > { %3699 = vmatprep.mubr.msk.bf16.mxu1 %vm872_vm0, %v4849_v58 }
 0x20b   : > { %3700 = vmatmul.mubr.msk.bf16.gmra.mrb[4].mxu1 %vm872_vm0, %v4868_v45 }
 0x20c   : > { %3703 = vmatprep.mubr.msk.bf16.mxu1 %vm872_vm0, %v4886_v47 }
 0x213   : > { %3704 = vmatmul.mubr.msk.bf16.gmra.mrb[8].mxu1 %vm872_vm0, %v4889_v8 }
 0x214   : > { %3707 = vmatprep.mubr.msk.bf16.mxu1 %vm872_vm0, %v4892_v28 }
 0x21b   : > { %3708 = vmatmul.mubr.msk.bf16.gmra.mrb[12].mxu1 %vm872_vm0, %v2688_v57 }
 0x270   : > { %v3577_v59 = vpop.f32.mrb[20].mxu0 }
 0x271   : > { %v1657_v58 = vpop.f32.mrb[21].mxu0 }
 0x272   : > { %v3578_v45 = vpop.f32.mrb[22].mxu0 }
 0x273   : > { %v1660_v14 = vpop.f32.mrb[23].mxu0 }
 0x278   : > { %v3581_v47 = vpop.f32.mrb[24].mxu0 }
 0x279   : > { %v1673_v1 = vpop.f32.mrb[25].mxu0 }
 0x27a   : > { %v3582_v2 = vpop.f32.mrb[26].mxu0 }
 0x27b   : > { %v1676_v20 = vpop.f32.mrb[27].mxu0 }
 0x280   : > { %v3585_v8 = vpop.f32.mrb[28].mxu0 }
 0x281   : > { %v1689_v12 = vpop.f32.mrb[29].mxu0 }
 0x282   : > { %v3586_v37 = vpop.f32.mrb[30].mxu0 }
 0x283   : > { %v1692_v11 = vpop.f32.mrb[31].mxu0 }
 0x288   : > { %v5093_v28 = vpop.f32.mrb[32].mxu0 }
 0x289   : > { %v5095_v13 = vpop.f32.mrb[33].mxu0 }
 0x28a   : > { %v5097_v16 = vpop.f32.mrb[34].mxu0 }
 0x28b   : > { %v5099_v32 = vpop.f32.mrb[35].mxu0 }
 0x2d6   : > { %v3697_v44 = vpop.f32.mrb[0].mxu1 }
 0x2d7   : > { %v3731_v62 = vadd.f32 %v3697_v44, %v3577_v59  ;;  %v2759_v17 = vpop.f32.mrb[1].mxu1 }
 0x2d8   : > { %v3732_v38 = vadd.f32 %v2759_v17, %v1657_v58  ;;  %v3698_v40 = vpop.f32.mrb[2].mxu1 }
 0x2d9   : > { %v2847_v54 = vmul.f32 %v3731_v62, %v5104_v39  ;;  %v3733_v18 = vadd.f32 %v3698_v40, %v3578_v45  ;;  %v2762_v25 = vpop.f32.mrb[3].mxu1 }
 0x2da   : > { %v2845_v27 = vmul.f32 %v3732_v38, %v5104_v39  ;;  %v3734_v26 = vadd.f32 %v2762_v25, %v1660_v14 }
 0x2db   : > { %v2870_v3 = vadd.f32 %v5109_v36, %v2847_v54  ;;  %v2848_v9 = vmul.f32 %v3733_v18, %v5104_v39 }
 0x2dc   : > { %v2868_v53 = vadd.f32 %v5109_v36, %v2845_v27  ;;  %v2846_v4 = vmul.f32 %v3734_v26, %v5104_v39 }
 0x2dd   : > { %v2871_v61 = vadd.f32 %v5109_v36, %v2848_v9  ;;  %v2886_v49 = vmax.f32 %v2870_v3, 0.0 }
 0x2de   : > { %v2869_v63 = vadd.f32 %v5109_v36, %v2846_v4  ;;  %v3701_v30 = vpop.f32.mrb[4].mxu1  ;;  %v2884_v55 = vmax.f32 %v2868_v53, 0.0 }
 0x2df   : > { %v2887_v52 = vmax.f32 %v2871_v61, 0.0  ;;  %v3735_v41 = vadd.f32 %v3701_v30, %v3581_v47  ;;  %v2775_v6 = vpop.f32.mrb[5].mxu1 }
 0x2e0   : > { %v2885_v48 = vmax.f32 %v2869_v63, 0.0  ;;  %v3736_v7 = vadd.f32 %v2775_v6, %v1673_v1  ;;  %v3702_v46 = vpop.f32.mrb[6].mxu1 }
 0x2e1   : > { %v2901_v60 = vpack.c.bf16 %v2887_v52, %v2886_v49  ;;  %v2851_v33 = vmul.f32 %v3735_v41, %v5104_v39  ;;  %v3737_v34 = vadd.f32 %v3702_v46, %v3582_v2  ;;  %v2778_v42 = vpop.f32.mrb[7].mxu1 }
 0x2e2   : > { %v2900_v56 = vpack.c.bf16 %v2885_v48, %v2884_v55  ;;  %v2849_v22 = vmul.f32 %v3736_v7, %v5104_v39  ;;  %v3738_v29 = vadd.f32 %v2778_v42, %v1676_v20 }
 0x2e3   : > { %v2874_v0 = vadd.f32 %v5109_v36, %v2851_v33  ;;  %v2852_v31 = vmul.f32 %v3737_v34, %v5104_v39  ;;  %v5164_v33 = vld [vmem:[%s5383_s25] ss:$0 sm:$0xff]  ;;  %s5237_s25 = scalar_lea.hbm %s5385_s22, %s3373_s16 }
 0x2e4   : > { %v2872_v35 = vadd.f32 %v5109_v36, %v2849_v22  ;;  %v2850_v15 = vmul.f32 %v3738_v29, %v5104_v39  ;;  %3715 = vmatprep.mubr.msk.bf16.mxu0 %vm872_vm0, %v2900_v56 }
 0x2e5   : > { %v2875_v10 = vadd.f32 %v5109_v36, %v2852_v31  ;;  %3716 = vmatmul.mubr.msk.bf16.vlgmr.msra.gmra.mrb[36].mxu0 %vm872_vm0, %v2901_v60  ;;  %v2890_v50 = vmax.f32 %v2874_v0, 0.0 }
 0x2e6   : > { %v2873_v24 = vadd.f32 %v5109_v36, %v2850_v15  ;;  %v3705_v43 = vpop.f32.mrb[8].mxu1  ;;  %v2888_v51 = vmax.f32 %v2872_v35, 0.0 }
 0x2e7   : > { %v2891_v23 = vmax.f32 %v2875_v10, 0.0  ;;  %v3739_v5 = vadd.f32 %v3705_v43, %v3585_v8  ;;  %v2791_v21 = vpop.f32.mrb[9].mxu1  ;;  %v3996_v10 = vld [vmem:[%s4385_s20 + $0x20] sm:$0xff] }
 0x2e8   : > { %v2889_v19 = vmax.f32 %v2873_v24, 0.0  ;;  %v3740_v57 = vadd.f32 %v2791_v21, %v1689_v12  ;;  %v3706_v59 = vpop.f32.mrb[10].mxu1 }
 0x2e9   : > { %v2903_v58 = vpack.c.bf16 %v2891_v23, %v2890_v50  ;;  %v2855_v45 = vmul.f32 %v3739_v5, %v5104_v39  ;;  %v3741_v14 = vadd.f32 %v3706_v59, %v3586_v37  ;;  %v2794_v47 = vpop.f32.mrb[11].mxu1  ;;  %v3997_v50 = vld [vmem:[%s4385_s20 + $0x10] sm:$0xff]  ;;  %v3999_v59 = vld [vmem:[%s4385_s20 + $0x18] sm:$0xff] }
 0x2ea   : > { %v2902_v1 = vpack.c.bf16 %v2889_v19, %v2888_v51  ;;  %v2853_v2 = vmul.f32 %v3740_v57, %v5104_v39  ;;  %v3742_v20 = vadd.f32 %v2794_v47, %v1692_v11  ;;  %v3998_v51 = vld [vmem:[%s4385_s20 + $0x28] sm:$0xff] }
 0x2eb   : > { %v2878_v44 = vadd.f32 %v5109_v36, %v2855_v45  ;;  %v2856_v62 = vmul.f32 %v3741_v14, %v5104_v39 }
 0x2ec   : > { %v2876_v8 = vadd.f32 %v5109_v36, %v2853_v2  ;;  %v2854_v17 = vmul.f32 %v3742_v20, %v5104_v39  ;;  %3719 = vmatprep.mubr.msk.bf16.mxu0 %vm872_vm0, %v2902_v1 }
 0x2ed   : > { %v2879_v12 = vadd.f32 %v5109_v36, %v2856_v62  ;;  %3720 = vmatmul.mubr.msk.bf16.gmra.mrb[40].mxu0 %vm872_vm0, %v2903_v58  ;;  %v2894_v40 = vmax.f32 %v2878_v44, 0.0 }
 0x2ee   : > { %v2877_v37 = vadd.f32 %v5109_v36, %v2854_v17  ;;  %v3709_v38 = vpop.f32.mrb[12].mxu1  ;;  %v2892_v25 = vmax.f32 %v2876_v8, 0.0 }
 0x2ef   : > { %v2895_v54 = vmax.f32 %v2879_v12, 0.0  ;;  %v3743_v11 = vadd.f32 %v3709_v38, %v5093_v28  ;;  %v2807_v18 = vpop.f32.mrb[13].mxu1  ;;  %v4000_v38 = vld [vmem:[%s4385_s20 + $0x40] sm:$0xff] }
 0x2f0   : > { %v2893_v27 = vmax.f32 %v2877_v37, 0.0  ;;  %v3744_v26 = vadd.f32 %v2807_v18, %v5095_v13  ;;  %v3710_v3 = vpop.f32.mrb[14].mxu1 }
 0x2f1   : > { %v2905_v9 = vpack.c.bf16 %v2895_v54, %v2894_v40  ;;  %v2859_v53 = vmul.f32 %v3743_v11, %v5104_v39  ;;  %v3745_v4 = vadd.f32 %v3710_v3, %v5097_v16  ;;  %v2810_v61 = vpop.f32.mrb[15].mxu1  ;;  %v4001_v11 = vld [vmem:[%s4385_s20 + $0x30] sm:$0xff] }
 0x2f2   : > { %v2904_v63 = vpack.c.bf16 %v2893_v27, %v2892_v25  ;;  %v2857_v30 = vmul.f32 %v3744_v26, %v5104_v39  ;;  %v3746_v49 = vadd.f32 %v2810_v61, %v5099_v32  ;;  %v4002_v26 = vld [vmem:[%s4385_s20 + $0x48] sm:$0xff] }
 0x2f3   : > { %v2882_v52 = vadd.f32 %v5109_v36, %v2859_v53  ;;  %v2860_v28 = vmul.f32 %v3745_v4, %v5104_v39  ;;  %v4003_v53 = vld [vmem:[%s4385_s20 + $0x38] sm:$0xff] }
 0x2f4   : > { %v2880_v41 = vadd.f32 %v5109_v36, %v2857_v30  ;;  %v2858_v13 = vmul.f32 %v3746_v49, %v5104_v39  ;;  %3723 = vmatprep.mubr.msk.bf16.mxu0 %vm872_vm0, %v2904_v63  ;;  %v5158_v39 = vld [vmem:[%s5382_s29] ss:$0 sm:$0xff] }
 0x2f5   : > { %v2883_v6 = vadd.f32 %v5109_v36, %v2860_v28  ;;  %3724 = vmatmul.mubr.msk.bf16.gmra.mrb[44].mxu0 %vm872_vm0, %v2905_v9  ;;  %v2898_v55 = vmax.f32 %v2882_v52, 0.0 }
 0x2f6   : > { %v2881_v16 = vadd.f32 %v5109_v36, %v2858_v13  ;;  %v2896_v48 = vmax.f32 %v2880_v41, 0.0 }
 0x2f7   : > { %v2899_v32 = vmax.f32 %v2883_v6, 0.0 }
 0x2f8   : > { %v2897_v7 = vmax.f32 %v2881_v16, 0.0 }
 0x2f9   : > { %v2907_v46 = vpack.c.bf16 %v2899_v32, %v2898_v55 }
 0x2fa   : > { %v2906_v60 = vpack.c.bf16 %v2897_v7, %v2896_v48  ;;  %v4004_v48 = vld [vmem:[%s4385_s20 + $0x60] sm:$0xff] }
 0x2fc   : > { %3727 = vmatprep.mubr.msk.bf16.mxu0 %vm872_vm0, %v2906_v60  ;;  %v4005_v60 = vld [vmem:[%s4385_s20 + $0x50] sm:$0xff] }
 0x2fd   : > { %3728 = vmatmul.mubr.msk.bf16.gmra.mrb[48].mxu0 %vm872_vm0, %v2907_v46 }
 0x3b8   : > { %v3717_v36 = vpop.f32.mrb[36].mxu0 }
 0x3b9   : > { %v3054_v34 = vmul.f32 %v3717_v36, %v5158_v39  ;;  %v2982_v42 = vpop.f32.mrb[37].mxu0 }
 0x3ba   : > { %v3052_v56 = vmul.f32 %v5158_v39, %v2982_v42  ;;  %v3718_v22 = vpop.f32.mrb[38].mxu0 }
 0x3bb   : > { %v3077_v29 = vadd.f32 %v5164_v33, %v3054_v34  ;;  %v3055_v0 = vmul.f32 %v3718_v22, %v5158_v39  ;;  %v2985_v31 = vpop.f32.mrb[39].mxu0 }
 0x3bc   : > { %v3075_v35 = vadd.f32 %v5164_v33, %v3052_v56  ;;  %v3053_v15 = vmul.f32 %v5158_v39, %v2985_v31  ;;  %v4006_v56 = vld [vmem:[%s4385_s20 + $0x68] sm:$0xff] }
 0x3bd   : > { %v3093_v24 = vadd.f32 %v3996_v10, %v3077_v29  ;;  %v3078_v43 = vadd.f32 %v5164_v33, %v3055_v0  ;;  %v4007_v0 = vld [vmem:[%s4385_s20 + $0x58] sm:$0xff] }
 0x3be   : > { %v3091_v23 = vadd.f32 %v3997_v50, %v3075_v35  ;;  %v3076_v5 = vadd.f32 %v5164_v33, %v3053_v15 }
 0x3bf   : > { %v3109_v21 = vmax.f32 %v3093_v24, 0.0  ;;  %v3094_v19 = vadd.f32 %v3998_v51, %v3078_v43 }
 0x3c0   : > { %v3107_v57 = vmax.f32 %v3091_v23, 0.0  ;;  %v3092_v58 = vadd.f32 %v3999_v59, %v3076_v5  ;;  %v3721_v45 = vpop.f32.mrb[40].mxu0  ;;  %v4008_v59 = vld [vmem:[%s4385_s20 + $0x80] sm:$0xff] }
 0x3c1   : > { %3125 = vst [vmem:[%s5180_s9 + $0x10] sm:$0xff] %v3109_v21  ;;  %v3110_v14 = vmax.f32 %v3094_v19, 0.0  ;;  %v3058_v47 = vmul.f32 %v3721_v45, %v5158_v39  ;;  %v2998_v1 = vpop.f32.mrb[41].mxu0 }
 0x3c2   : > { %3123 = vst [vmem:[%s5180_s9] sm:$0xff] %v3107_v57  ;;  %v3108_v2 = vmax.f32 %v3092_v58, 0.0  ;;  %v3056_v20 = vmul.f32 %v5158_v39, %v2998_v1  ;;  %v3722_v44 = vpop.f32.mrb[42].mxu0 }
 0x3c3   : > { %3126 = vst [vmem:[%s5180_s9 + $0x18] sm:$0xff] %v3110_v14  ;;  %v3081_v62 = vadd.f32 %v5164_v33, %v3058_v47  ;;  %v3059_v8 = vmul.f32 %v3722_v44, %v5158_v39  ;;  %v3001_v17 = vpop.f32.mrb[43].mxu0  ;;  %v4009_v14 = vld [vmem:[%s4385_s20 + $0x70] sm:$0xff] }
 0x3c4   : > { %3124 = vst [vmem:[%s5180_s9 + $0x8] sm:$0xff] %v3108_v2  ;;  %v3079_v12 = vadd.f32 %v5164_v33, %v3056_v20  ;;  %v3057_v37 = vmul.f32 %v5158_v39, %v3001_v17  ;;  %v4010_v20 = vld [vmem:[%s4385_s20 + $0x88] sm:$0xff] }
 0x3c5   : > { %v3097_v40 = vadd.f32 %v4000_v38, %v3081_v62  ;;  %v3082_v54 = vadd.f32 %v5164_v33, %v3059_v8 }
 0x3c6   : > { %v3095_v18 = vadd.f32 %v4001_v11, %v3079_v12  ;;  %v3080_v25 = vadd.f32 %v5164_v33, %v3057_v37 }
 0x3c7   : > { %v3113_v27 = vmax.f32 %v3097_v40, 0.0  ;;  %v3098_v3 = vadd.f32 %v4002_v26, %v3082_v54 }
 0x3c8   : > { %v3111_v9 = vmax.f32 %v3095_v18, 0.0  ;;  %v3096_v4 = vadd.f32 %v4003_v53, %v3080_v25  ;;  %v3725_v61 = vpop.f32.mrb[44].mxu0 }
 0x3c9   : > { %3129 = vst [vmem:[%s5180_s9 + $0x30] sm:$0xff] %v3113_v27  ;;  %v3114_v63 = vmax.f32 %v3098_v3, 0.0  ;;  %v3062_v30 = vmul.f32 %v3725_v61, %v5158_v39  ;;  %v3014_v49 = vpop.f32.mrb[45].mxu0 }
 0x3ca   : > { %3127 = vst [vmem:[%s5180_s9 + $0x20] sm:$0xff] %v3111_v9  ;;  %v3112_v52 = vmax.f32 %v3096_v4, 0.0  ;;  %v3060_v28 = vmul.f32 %v5158_v39, %v3014_v49  ;;  %v3726_v41 = vpop.f32.mrb[46].mxu0 }
 0x3cb   : > { %3130 = vst [vmem:[%s5180_s9 + $0x38] sm:$0xff] %v3114_v63  ;;  %v3085_v13 = vadd.f32 %v5164_v33, %v3062_v30  ;;  %v3063_v6 = vmul.f32 %v3726_v41, %v5158_v39  ;;  %v3017_v16 = vpop.f32.mrb[47].mxu0 }
 0x3cc   : > { %3128 = vst [vmem:[%s5180_s9 + $0x28] sm:$0xff] %v3112_v52  ;;  %v3083_v55 = vadd.f32 %v5164_v33, %v3060_v28  ;;  %v3061_v32 = vmul.f32 %v5158_v39, %v3017_v16 }
 0x3cd   : > { %v3101_v7 = vadd.f32 %v4004_v48, %v3085_v13  ;;  %v3086_v46 = vadd.f32 %v5164_v33, %v3063_v6 }
 0x3ce   : > { %v3099_v36 = vadd.f32 %v4005_v60, %v3083_v55  ;;  %v3084_v34 = vadd.f32 %v5164_v33, %v3061_v32 }
 0x3cf   : > { %v3117_v42 = vmax.f32 %v3101_v7, 0.0  ;;  %v3102_v22 = vadd.f32 %v4006_v56, %v3086_v46 }
 0x3d0   : > { %v3115_v29 = vmax.f32 %v3099_v36, 0.0  ;;  %v3100_v31 = vadd.f32 %v4007_v0, %v3084_v34  ;;  %v3729_v35 = vpop.f32.mrb[48].mxu0 }
 0x3d1   : > { %3133 = vst [vmem:[%s5180_s9 + $0x50] sm:$0xff] %v3117_v42  ;;  %v3118_v15 = vmax.f32 %v3102_v22, 0.0  ;;  %v3066_v10 = vmul.f32 %v3729_v35, %v5158_v39  ;;  %v3030_v24 = vpop.f32.mrb[49].mxu0 }
 0x3d2   : > { %3131 = vst [vmem:[%s5180_s9 + $0x40] sm:$0xff] %v3115_v29  ;;  %v3116_v43 = vmax.f32 %v3100_v31, 0.0  ;;  %v3064_v50 = vmul.f32 %v5158_v39, %v3030_v24  ;;  %v3730_v23 = vpop.f32.mrb[50].mxu0 }
 0x3d3   : > { %3134 = vst [vmem:[%s5180_s9 + $0x58] sm:$0xff] %v3118_v15  ;;  %v3089_v5 = vadd.f32 %v5164_v33, %v3066_v10  ;;  %v3067_v21 = vmul.f32 %v3730_v23, %v5158_v39  ;;  %v3033_v51 = vpop.f32.mrb[51].mxu0 }
 0x3d4   : > { %3132 = vst [vmem:[%s5180_s9 + $0x48] sm:$0xff] %v3116_v43  ;;  %v3087_v19 = vadd.f32 %v5164_v33, %v3064_v50  ;;  %v3065_v57 = vmul.f32 %v5158_v39, %v3033_v51  ;;  %v4011_v39 = vld [vmem:[%s4385_s20 + $0x78] sm:$0xff]  ;;  %s4042_s20 = scalar_lea.vmem %s5239_s5, 2048 }
 0x3d5   : > { %v3105_v58 = vadd.f32 %v4008_v59, %v3089_v5  ;;  %v3090_v45 = vadd.f32 %v5164_v33, %v3067_v21  ;;  %p4043_p1 = scmp.ne.s32.totalorder %s5239_s5, %s4042_s20  ;;  %p4050_p8 = scmp.lt.s32.totalorder %s4048_s21, %s4042_s20 }
 0x3d6   : > { %v3103_v47 = vadd.f32 %v4009_v14, %v3087_v19  ;;  %v3088_v1 = vadd.f32 %v5164_v33, %v3065_v57 }
 0x3d7   : > { %v3121_v2 = vmax.f32 %v3105_v58, 0.0  ;;  %v3106_v44 = vadd.f32 %v4010_v20, %v3090_v45  ;;  %p4044_p13 = pnand %p4043_p1, %p5387_p3  ;;  %p4051_p5 = por %p4050_p8, %p4049_p4 }
 0x3d8   : > { %v3119_v62 = vmax.f32 %v3103_v47, 0.0  ;;  %v3104_v8 = vadd.f32 %v4011_v39, %v3088_v1 }
 0x3d9   : > { %3137 = vst [vmem:[%s5180_s9 + $0x70] sm:$0xff] %v3121_v2  ;;  %v3122_v17 = vmax.f32 %v3106_v44, 0.0  ;;  %p4045_p2 = pneg %p4044_p13 }
 0x3da   : > { %3135 = vst [vmem:[%s5180_s9 + $0x60] sm:$0xff] %v3119_v62  ;;  %v3120_v33 = vmax.f32 %v3104_v8, 0.0 }
 0x3db   : > { %3138 = vst [vmem:[%s5180_s9 + $0x78] sm:$0xff] %v3122_v17  ;;  %p4052_p10 = pnand %p4051_p5, %p4045_p2 }
 0x3dc   : > { %3136 = vst [vmem:[%s5180_s9 + $0x68] sm:$0xff] %v3120_v33 }
 0x3dd   : > { %4055 = shalt.err (!%p4052_p10)
}
 0x3de   : > { %s4056_s12 = scalar_lea.hbm %s5237_s25, 2048  ;;  %s4060_s16 = scalar_lea.hbm %s5386_s26, 8192 }
 0x3df   : > { %p4057_p11 = scmp.ne.s32.totalorder %s5237_s25, %s4056_s12  ;;  %p4061_p12 = scmp.lt.u32.totalorder %s5237_s25, %s5386_s26 }
 0x3e0   : > { %p4062_p7 = scmp.lt.u32.totalorder %s4060_s16, %s4056_s12  ;;  %p4064_p1 = scmp.lt.u32.totalorder %s4056_s12, %s5237_s25 }
 0x3e1   : > { %p4058_p6 = pnand %p4057_p11, %p5387_p3 }
 0x3e2   : > { %p4063_p0 = por %p4062_p7, %p4061_p12 }
 0x3e3   : > { %p4059_p9 = pneg %p4058_p6 }
 0x3e4   : > { %p4065_p13 = por %p4064_p1, %p4063_p0 }
 0x3e6   : > { %p4066_p2 = pnand %p4065_p13, %p4059_p9 }
 0x3e8   : > { %4069 = shalt.err (!%p4066_p2)
}
 0x3e9   : > { %s4170_s22 = smov 128   ;;  %s4171_s20 = smov 8  }
 0x3ea   : > { %3864 = dma.vmem_to_hbm [thread:$0]  (%p5387_p3), %s5239_s5, 2048, %s5237_s25, %s5246_s11, %s4170_s22, %s4170_s22, %s4171_s20  }
 0x3eb PF: > { %p3875_p4 = scmp.ge.s32.totalorder %s4164_s23, 2  ;;  %s3171_s30 = sand.u32 1, %s4124_s13  }
 0x3ec   : > { %p5388_p8 = scmp.ne.s32.totalorder %s5340_s10, 0  ;;  %s3172_s24 = scalar_lea.sflag [#allocation5], %s3171_s30 }
 0x3ee   : > { %p3871_p5 = pnand %p3875_p4, %p5388_p8 }
 0x3f0   : > { %4119 = dma.done.wait (!%p3871_p5), %s3172_s24, 2048  }
 0x3f1   : > { %4121 = vsyncadd (!%p3871_p5), %s3172_s24, 4294965248  ;;  %s26_s23 = sadd.s32 1, %s4164_s23   ;;  %s5389_s19 = sld [smem:[#allocation10_spill]] }
 0x3f2   : > { %p23_p10 = scmp.ge.s32.totalorder %s26_s23, 6   ;;  %s5390_s20 = sld [smem:[#allocation11_spill]] }
 0x3f3   : > { %s5391_s21 = sld [smem:[#allocation12_spill]]  ;;  %s5392_s22 = sld [smem:[#allocation13_spill]] }
 0x3f4   : > { %s5393_s13 = smov %s4128_s14  ;;  %s5394_s14 = smov %s4132_s15 }
 0x3f5   : > { %s5395_s15 = smov %s4317_s8  ;;  %s5396_s16 = smov %s4140_s17 }
 0x3f6   : > { %s5397_s17 = smov %s4144_s18  ;;  %s5398_s18 = smov %s4320_s6 }
 0x3f7   :  { %25 = sbr.rel (!%p23_p10) target bundleno = 15 (0xf), region = 105 }
 0x3fe   :  { %3177 = vsyncpa [#allocation4], 1 }
 0x3ff   :  { %3179 = vsyncpa [#allocation4 + $0x1], 1 }
 0x400   :  { %3180 = vsyncpa [#allocation5], 1 }
 0x401   :  { %3182 = vsyncpa [#allocation5 + $0x1], 1 }

</bundles_post_ra>
